<compile_context>
chip_gen: v7x
topology: tpu7x:2x2x1
jax: 0.10.0
libtpu: 0.0.40
codegen_flags: <defaults>
</compile_context>

<pallas_src>
import numpy as np
import jax
import jax.numpy as jnp
from jax.experimental import pallas as pl
from jax.experimental.pallas import tpu as pltpu

LEVELS = (1, 2, 4, 6)


# ----------------------------------------------------------------------------
# Host-side (deterministic, tiny) operator construction.
# ----------------------------------------------------------------------------
def _adaptive_avg_pool_matrix(in_size: int, out_size: int) -> np.ndarray:
    """P[i, j] so that P @ v reproduces torch AdaptiveAvgPool1d along one axis."""
    P = np.zeros((out_size, in_size), dtype=np.float64)
    for i in range(out_size):
        start = (i * in_size) // out_size
        end = -(-((i + 1) * in_size) // out_size)  # ceil
        P[i, start:end] = 1.0 / float(end - start)
    return P


def _bilinear_upsample_matrix(out_size: int, in_size: int) -> np.ndarray:
    """U[o, j] reproducing torch bilinear resize (align_corners=False) on one axis."""
    U = np.zeros((out_size, in_size), dtype=np.float64)
    scale = in_size / out_size
    for o in range(out_size):
        src = max((o + 0.5) * scale - 0.5, 0.0)
        i0 = min(int(np.floor(src)), in_size - 1)
        i1 = i0 + 1 if i0 < in_size - 1 else i0
        frac = src - i0
        U[o, i0] += 1.0 - frac
        U[o, i1] += frac
    return U


def _kron_operators_cat_T(H: int, W: int, levels) -> np.ndarray:
    """[K_1^T | ... | K_L^T] with K_l = A_h^{(l)} ⊗ A_w^{(l)}; shape (H*W, L*H*W)."""
    mats = []
    for lvl in levels:
        a_h = _bilinear_upsample_matrix(H, lvl) @ _adaptive_avg_pool_matrix(H, lvl)
        a_w = _bilinear_upsample_matrix(W, lvl) @ _adaptive_avg_pool_matrix(W, lvl)
        mats.append(np.kron(a_h, a_w).T)                    # (HW, HW)
    return np.concatenate(mats, axis=1).astype(np.float32)  # (HW, L*HW)


# ----------------------------------------------------------------------------
# Pallas kernel: all levels fused into one matmul per grid step.
# ----------------------------------------------------------------------------
def _spp_kernel(kT_ref, x_ref, o_ref):
    # kT_ref: (HW, L*HW)  fused per-level operators (constant index_map, resident)
    # x_ref : (m, HW)     m = r * c_tile flattened (n, c) planes
    # o_ref : (r, L, c_tile, HW)
    r, L, c_tile, HW = o_ref.shape
    # Single MXU matmul covering all pyramid levels at once.
    y = jnp.dot(x_ref[...], kT_ref[...], preferred_element_type=jnp.float32)
    for b in range(r):                     # static unroll: r*L lane-dense stores
        for l in range(L):
            o_ref[b, l] = y[b * c_tile:(b + 1) * c_tile,
                            l * HW:(l + 1) * HW].astype(o_ref.dtype)


def _vmem_capacity_bytes() -> int:
    """Per-TensorCore VMEM capacity; conservative (v7x) default if the query fails."""
    try:
        cap = getattr(pltpu.get_tpu_info(), "vmem_capacity_bytes", None)
        if cap:
            return int(cap)
    except Exception:
        pass
    return 64 << 20


def _choose_block(N: int, C: int, HW: int, L: int, budget_bytes: int):
    """Pick (r, c_tile): each grid step handles r whole batch elements x c_tile
    channels (either r == 1 or c_tile == C), i.e. m = r*c_tile rows of the
    flattened (N*C, HW) input."""
    P = N * C

    def vmem_needed(m):
        # double-buffered input + output blocks, single-buffered fused operator
        return 2 * 4 * m * HW * (1 + L) + 4 * L * HW * HW

    def rows_legal(m):
        # (8,128) BlockSpec rule on the flattened input's second-minor dim.
        return m % 8 == 0 or m == P

    cands = {}
    for ct in range(8, C + 1, 8):               # channel tiling within a batch elem
        if C % ct == 0 and rows_legal(ct):
            cands[ct] = (1, ct)
    if rows_legal(C):
        cands.setdefault(C, (1, C))
    for r in range(1, N + 1):                   # fold whole batch elems (small C)
        m = r * C
        if N % r == 0 and rows_legal(m):
            cands.setdefault(m, (r, C))

    fitting = {m: rc for m, rc in cands.items() if vmem_needed(m) <= budget_bytes} or cands
    # Prefer the largest block that still leaves >= 2 grid steps (megacore sharding,
    # pipeline depth); otherwise the largest block overall.
    multi = {m: rc for m, rc in fitting.items() if P // m >= 2}
    pick = multi or fitting
    return pick[max(pick)]


def spatial_pyramid_pooling(x: jax.Array, levels=LEVELS) -> jax.Array:
    N, C, H, W = x.shape
    L = len(levels)
    HW = H * W
    P = N * C

    kT = jnp.asarray(_kron_operators_cat_T(H, W, levels))   # (HW, L*HW) f32
    xf = x.reshape(P, HW)                                    # metadata-only reshape

    cap = _vmem_capacity_bytes()
    budget = int(cap * 0.70)                                 # ~45 MiB v7x, ~90 MiB v5e/v6e
    r, c_tile = _choose_block(N, C, HW, L, budget)
    m_tile = r * c_tile
    grid = (P // m_tile,)
    nb = C // c_tile

    def _run(single_buffer_operator: bool):
        k_bufs = 1 if single_buffer_operator else 2
        needed = 2 * 4 * m_tile * HW * (1 + L) + k_bufs * 4 * L * HW * HW
        vmem_limit = max(16 << 20, needed + (4 << 20))
        vmem_limit = min(vmem_limit, int(cap * 0.75))        # leave v7x headroom
        if vmem_limit < needed:                              # soft-budget overflow
            vmem_limit = min(needed + (2 << 20), cap - (2 << 20))

        k_kwargs = {"pipeline_mode": pl.Buffered(1)} if single_buffer_operator else {}
        k_spec = pl.BlockSpec((HW, L * HW), lambda i: (0, 0), **k_kwargs)
        x_spec = pl.BlockSpec((m_tile, HW), lambda i: (i, 0))
        if c_tile == C:                                      # batch-folded blocks
            out_spec = pl.BlockSpec((r, L, C, HW), lambda i: (i, 0, 0, 0))
        else:                                                # channel-tiled blocks
            out_spec = pl.BlockSpec((1, L, c_tile, HW),
                                    lambda i: (i // nb, 0, i % nb, 0))

        return pl.pallas_call(
            _spp_kernel,
            out_shape=jax.ShapeDtypeStruct((N, L, C, HW), x.dtype),
            grid=grid,
            in_specs=[k_spec, x_spec],
            out_specs=out_spec,
            compiler_params=pltpu.CompilerParams(
                dimension_semantics=("parallel",),
                vmem_limit_bytes=vmem_limit,
            ),
            cost_estimate=pl.CostEstimate(
                flops=2 * P * L * HW * HW,
                transcendentals=0,
                bytes_accessed=4 * (P * HW * (1 + L) + L * HW * HW),
            ),
        )(kT, xf)

    try:
        out = _run(True)
    except Exception:
        # Fallback: this jax version rejected pipeline_mode=pl.Buffered(1) on the
        # constant operator BlockSpec — use default double-buffering instead.
        out = _run(False)

    # (N, L, C, H*W) -> (N, L*C, H, W): pure metadata reshape (no transpose),
    # matching torch.cat of the per-level outputs along dim=1.
    return out.reshape(N, L * C, H, W)


# ----------------------------------------------------------------------------
# Independent reference: direct adaptive-avg-pool + bilinear resize (float64 numpy),
# following torch's index formulas (not the precomputed matrices).
# ----------------------------------------------------------------------------
def _reference_numpy(x_np: np.ndarray, levels=LEVELS) -> np.ndarray:
    N, C, H, W = x_np.shape
    outs = []
    for lvl in levels:
        pooled = np.zeros((N, C, lvl, lvl), dtype=np.float64)
        for i in range(lvl):
            hs, he = (i * H) // lvl, -(-((i + 1) * H) // lvl)
            for j in range(lvl):
                ws, we = (j * W) // lvl, -(-((j + 1) * W) // lvl)
                pooled[:, :, i, j] = x_np[:, :, hs:he, ws:we].mean(axis=(2, 3))
        up = np.zeros((N, C, H, W), dtype=np.float64)
        sh, sw = lvl / H, lvl / W
        for oi in range(H):
            si = max((oi + 0.5) * sh - 0.5, 0.0)
            i0 = min(int(np.floor(si)), lvl - 1)
            i1 = min(i0 + 1, lvl - 1)
            fi = si - i0
            for oj in range(W):
                sj = max((oj + 0.5) * sw - 0.5, 0.0)
                j0 = min(int(np.floor(sj)), lvl - 1)
                j1 = min(j0 + 1, lvl - 1)
                fj = sj - j0
                up[:, :, oi, oj] = (
                    pooled[:, :, i0, j0] * (1 - fi) * (1 - fj)
                    + pooled[:, :, i0, j1] * (1 - fi) * fj
                    + pooled[:, :, i1, j0] * fi * (1 - fj)
                    + pooled[:, :, i1, j1] * fi * fj
                )
        outs.append(up)
    return np.concatenate(outs, axis=1)


if __name__ == "__main__":
    # Primary test: small shapes consistent with SPP's role in BasicParseNet.
    N, C, H, W = 2, 4, 16, 16
    x = jax.random.normal(jax.random.PRNGKey(0), (N, C, H, W), dtype=jnp.float32)
    out = jax.block_until_ready(spatial_pyramid_pooling(x))
    assert out.shape == (N, C * len(LEVELS), H, W), out.shape
    ref = _reference_numpy(np.asarray(x, dtype=np.float64))
    np.testing.assert_allclose(np.asarray(out), ref, rtol=1e-4, atol=1e-5)

    # Secondary test: spatial size NOT divisible by the pooling levels.
    N2, C2, H2, W2 = 1, 3, 10, 14
    x2 = jax.random.normal(jax.random.PRNGKey(1), (N2, C2, H2, W2), dtype=jnp.float32)
    out2 = jax.block_until_ready(spatial_pyramid_pooling(x2))
    assert out2.shape == (N2, C2 * len(LEVELS), H2, W2), out2.shape
    ref2 = _reference_numpy(np.asarray(x2, dtype=np.float64))
    np.testing.assert_allclose(np.asarray(out2), ref2, rtol=1e-4, atol=1e-5)

    print("KERNEL_OK")
</pallas_src>

<mosaic_0001>
module attributes {stable_mosaic.version = 11 : i64} {
  func.func @_spp_kernel(%arg0: i32, %arg1: memref<256x1024xf32, #tpu.memory_space<vmem>>, %arg2: memref<8x256xf32, #tpu.memory_space<vmem>>, %arg3: memref<2x4x4x256xf32, #tpu.memory_space<vmem>>) attributes {dimension_semantics = [#tpu.dimension_semantics<parallel>], iteration_bounds = array<i64: 1>, scalar_prefetch = 0 : i64, scratch_operands = 0 : i64, tpu.core_type = #tpu.core_type<tc>, window_params = [{pipeline_mode = #tpu.pipeline_mode<synchronous>, transform_indices = @transform_0, window_bounds = array<i64: 256, 1024>}, {transform_indices = @transform_1, window_bounds = array<i64: 8, 256>}, {transform_indices = @transform_2, window_bounds = array<i64: 2, 4, 4, 256>}]} {
    %c0 = arith.constant 0 : index
    %c0_0 = arith.constant 0 : index
    %0 = vector.load %arg2[%c0, %c0_0] : memref<8x256xf32, #tpu.memory_space<vmem>>, vector<8x256xf32>
    %c0_1 = arith.constant 0 : index
    %c0_2 = arith.constant 0 : index
    %1 = vector.load %arg1[%c0_1, %c0_2] : memref<256x1024xf32, #tpu.memory_space<vmem>>, vector<256x1024xf32>
    %cst = arith.constant dense<0.000000e+00> : vector<8x1024xf32>
    %2 = tpu.matmul %0, %1, %cst {dimension_numbers = #tpu.dot_dimension_numbers<[1], [0], [0], [1], [0, 0, 1, 1], [], []>} : vector<8x256xf32>, vector<256x1024xf32>, vector<8x1024xf32> -> vector<8x1024xf32>
    %3 = vector.extract_strided_slice %2 {offsets = [0, 0], sizes = [4, 256], strides = [1, 1]} : vector<8x1024xf32> to vector<4x256xf32>
    %c0_3 = arith.constant 0 : index
    %c0_4 = arith.constant 0 : index
    %c0_5 = arith.constant 0 : index
    %c0_6 = arith.constant 0 : index
    %4 = vector.load %arg3[%c0_3, %c0_4, %c0_5, %c0_6] : memref<2x4x4x256xf32, #tpu.memory_space<vmem>>, vector<1x1x4x256xf32>
    %5 = vector.shape_cast %4 : vector<1x1x4x256xf32> to vector<4x256xf32>
    %6 = vector.shape_cast %3 : vector<4x256xf32> to vector<1x1x4x256xf32>
    tpu.vector_store %arg3[%c0_3, %c0_4, %c0_5, %c0_6], %6 {strides = array<i32>} : memref<2x4x4x256xf32, #tpu.memory_space<vmem>>, vector<1x1x4x256xf32>,
    %7 = vector.extract_strided_slice %2 {offsets = [0, 256], sizes = [4, 256], strides = [1, 1]} : vector<8x1024xf32> to vector<4x256xf32>
    %c0_7 = arith.constant 0 : index
    %c1 = arith.constant 1 : index
    %c0_8 = arith.constant 0 : index
    %c0_9 = arith.constant 0 : index
    %8 = vector.load %arg3[%c0_7, %c1, %c0_8, %c0_9] : memref<2x4x4x256xf32, #tpu.memory_space<vmem>>, vector<1x1x4x256xf32>
    %9 = vector.shape_cast %8 : vector<1x1x4x256xf32> to vector<4x256xf32>
    %10 = vector.shape_cast %7 : vector<4x256xf32> to vector<1x1x4x256xf32>
    tpu.vector_store %arg3[%c0_7, %c1, %c0_8, %c0_9], %10 {strides = array<i32>} : memref<2x4x4x256xf32, #tpu.memory_space<vmem>>, vector<1x1x4x256xf32>,
    %11 = vector.extract_strided_slice %2 {offsets = [0, 512], sizes = [4, 256], strides = [1, 1]} : vector<8x1024xf32> to vector<4x256xf32>
    %c0_10 = arith.constant 0 : index
    %c2 = arith.constant 2 : index
    %c0_11 = arith.constant 0 : index
    %c0_12 = arith.constant 0 : index
    %12 = vector.load %arg3[%c0_10, %c2, %c0_11, %c0_12] : memref<2x4x4x256xf32, #tpu.memory_space<vmem>>, vector<1x1x4x256xf32>
    %13 = vector.shape_cast %12 : vector<1x1x4x256xf32> to vector<4x256xf32>
    %14 = vector.shape_cast %11 : vector<4x256xf32> to vector<1x1x4x256xf32>
    tpu.vector_store %arg3[%c0_10, %c2, %c0_11, %c0_12], %14 {strides = array<i32>} : memref<2x4x4x256xf32, #tpu.memory_space<vmem>>, vector<1x1x4x256xf32>,
    %15 = vector.extract_strided_slice %2 {offsets = [0, 768], sizes = [4, 256], strides = [1, 1]} : vector<8x1024xf32> to vector<4x256xf32>
    %c0_13 = arith.constant 0 : index
    %c3 = arith.constant 3 : index
    %c0_14 = arith.constant 0 : index
    %c0_15 = arith.constant 0 : index
    %16 = vector.load %arg3[%c0_13, %c3, %c0_14, %c0_15] : memref<2x4x4x256xf32, #tpu.memory_space<vmem>>, vector<1x1x4x256xf32>
    %17 = vector.shape_cast %16 : vector<1x1x4x256xf32> to vector<4x256xf32>
    %18 = vector.shape_cast %15 : vector<4x256xf32> to vector<1x1x4x256xf32>
    tpu.vector_store %arg3[%c0_13, %c3, %c0_14, %c0_15], %18 {strides = array<i32>} : memref<2x4x4x256xf32, #tpu.memory_space<vmem>>, vector<1x1x4x256xf32>,
    %19 = vector.extract_strided_slice %2 {offsets = [4, 0], sizes = [4, 256], strides = [1, 1]} : vector<8x1024xf32> to vector<4x256xf32>
    %c1_16 = arith.constant 1 : index
    %c0_17 = arith.constant 0 : index
    %c0_18 = arith.constant 0 : index
    %c0_19 = arith.constant 0 : index
    %20 = vector.load %arg3[%c1_16, %c0_17, %c0_18, %c0_19] : memref<2x4x4x256xf32, #tpu.memory_space<vmem>>, vector<1x1x4x256xf32>
    %21 = vector.shape_cast %20 : vector<1x1x4x256xf32> to vector<4x256xf32>
    %22 = vector.shape_cast %19 : vector<4x256xf32> to vector<1x1x4x256xf32>
    tpu.vector_store %arg3[%c1_16, %c0_17, %c0_18, %c0_19], %22 {strides = array<i32>} : memref<2x4x4x256xf32, #tpu.memory_space<vmem>>, vector<1x1x4x256xf32>,
    %23 = vector.extract_strided_slice %2 {offsets = [4, 256], sizes = [4, 256], strides = [1, 1]} : vector<8x1024xf32> to vector<4x256xf32>
    %c1_20 = arith.constant 1 : index
    %c1_21 = arith.constant 1 : index
    %c0_22 = arith.constant 0 : index
    %c0_23 = arith.constant 0 : index
    %24 = vector.load %arg3[%c1_20, %c1_21, %c0_22, %c0_23] : memref<2x4x4x256xf32, #tpu.memory_space<vmem>>, vector<1x1x4x256xf32>
    %25 = vector.shape_cast %24 : vector<1x1x4x256xf32> to vector<4x256xf32>
    %26 = vector.shape_cast %23 : vector<4x256xf32> to vector<1x1x4x256xf32>
    tpu.vector_store %arg3[%c1_20, %c1_21, %c0_22, %c0_23], %26 {strides = array<i32>} : memref<2x4x4x256xf32, #tpu.memory_space<vmem>>, vector<1x1x4x256xf32>,
    %27 = vector.extract_strided_slice %2 {offsets = [4, 512], sizes = [4, 256], strides = [1, 1]} : vector<8x1024xf32> to vector<4x256xf32>
    %c1_24 = arith.constant 1 : index
    %c2_25 = arith.constant 2 : index
    %c0_26 = arith.constant 0 : index
    %c0_27 = arith.constant 0 : index
    %28 = vector.load %arg3[%c1_24, %c2_25, %c0_26, %c0_27] : memref<2x4x4x256xf32, #tpu.memory_space<vmem>>, vector<1x1x4x256xf32>
    %29 = vector.shape_cast %28 : vector<1x1x4x256xf32> to vector<4x256xf32>
    %30 = vector.shape_cast %27 : vector<4x256xf32> to vector<1x1x4x256xf32>
    tpu.vector_store %arg3[%c1_24, %c2_25, %c0_26, %c0_27], %30 {strides = array<i32>} : memref<2x4x4x256xf32, #tpu.memory_space<vmem>>, vector<1x1x4x256xf32>,
    %31 = vector.extract_strided_slice %2 {offsets = [4, 768], sizes = [4, 256], strides = [1, 1]} : vector<8x1024xf32> to vector<4x256xf32>
    %c1_28 = arith.constant 1 : index
    %c3_29 = arith.constant 3 : index
    %c0_30 = arith.constant 0 : index
    %c0_31 = arith.constant 0 : index
    %32 = vector.load %arg3[%c1_28, %c3_29, %c0_30, %c0_31] : memref<2x4x4x256xf32, #tpu.memory_space<vmem>>, vector<1x1x4x256xf32>
    %33 = vector.shape_cast %32 : vector<1x1x4x256xf32> to vector<4x256xf32>
    %34 = vector.shape_cast %31 : vector<4x256xf32> to vector<1x1x4x256xf32>
    tpu.vector_store %arg3[%c1_28, %c3_29, %c0_30, %c0_31], %34 {strides = array<i32>} : memref<2x4x4x256xf32, #tpu.memory_space<vmem>>, vector<1x1x4x256xf32>,
    return
  }
  func.func @transform_0(%arg0: i32) -> (i32, i32) {
    %c0_i32 = arith.constant 0 : i32
    %c0_i32_0 = arith.constant 0 : i32
    %c0_i32_1 = arith.constant 0 : i32
    return %c0_i32, %c0_i32_0 : i32, i32
  }
  func.func @transform_1(%arg0: i32) -> (i32, i32) {
    %c0_i32 = arith.constant 0 : i32
    %c0_i32_0 = arith.constant 0 : i32
    return %arg0, %c0_i32 : i32, i32
  }
  func.func @transform_2(%arg0: i32) -> (i32, i32, i32, i32) {
    %c0_i32 = arith.constant 0 : i32
    %c0_i32_0 = arith.constant 0 : i32
    %c0_i32_1 = arith.constant 0 : i32
    %c0_i32_2 = arith.constant 0 : i32
    return %arg0, %c0_i32, %c0_i32_0, %c0_i32_1 : i32, i32, i32, i32
  }
}

module attributes {stable_mosaic.version = 11 : i64} {
  func.func @_spp_kernel(%arg0: i32, %arg1: memref<256x1024xf32, #tpu.memory_space<vmem>>, %arg2: memref<8x256xf32, #tpu.memory_space<vmem>>, %arg3: memref<2x4x4x256xf32, #tpu.memory_space<vmem>>) attributes {dimension_semantics = [#tpu.dimension_semantics<parallel>], iteration_bounds = array<i64: 1>, scalar_prefetch = 0 : i64, scratch_operands = 0 : i64, tpu.core_type = #tpu.core_type<tc>, window_params = [{pipeline_mode = #tpu.pipeline_mode<synchronous>, transform_indices = @transform_0, window_bounds = array<i64: 256, 1024>}, {transform_indices = @transform_1, window_bounds = array<i64: 8, 256>}, {transform_indices = @transform_2, window_bounds = array<i64: 2, 4, 4, 256>}]} {
    %c0 = arith.constant 0 : index
    %c0_0 = arith.constant 0 : index
    %0 = vector.load %arg2[%c0, %c0_0] : memref<8x256xf32, #tpu.memory_space<vmem>>, vector<8x256xf32>
    %c0_1 = arith.constant 0 : index
    %c0_2 = arith.constant 0 : index
    %1 = vector.load %arg1[%c0_1, %c0_2] : memref<256x1024xf32, #tpu.memory_space<vmem>>, vector<256x1024xf32>
    %cst = arith.constant dense<0.000000e+00> : vector<8x1024xf32>
    %2 = tpu.matmul %0, %1, %cst {dimension_numbers = #tpu.dot_dimension_numbers<[1], [0], [0], [1], [0, 0, 1, 1], [], []>} : vector<8x256xf32>, vector<256x1024xf32>, vector<8x1024xf32> -> vector<8x1024xf32>
    %3 = vector.extract_strided_slice %2 {offsets = [0, 0], sizes = [4, 256], strides = [1, 1]} : vector<8x1024xf32> to vector<4x256xf32>
    %c0_3 = arith.constant 0 : index
    %c0_4 = arith.constant 0 : index
    %c0_5 = arith.constant 0 : index
    %c0_6 = arith.constant 0 : index
    %4 = vector.load %arg3[%c0_3, %c0_4, %c0_5, %c0_6] : memref<2x4x4x256xf32, #tpu.memory_space<vmem>>, vector<1x1x4x256xf32>
    %5 = vector.shape_cast %4 : vector<1x1x4x256xf32> to vector<4x256xf32>
    %6 = vector.shape_cast %3 : vector<4x256xf32> to vector<1x1x4x256xf32>
    tpu.vector_store %arg3[%c0_3, %c0_4, %c0_5, %c0_6], %6 {strides = array<i32>} : memref<2x4x4x256xf32, #tpu.memory_space<vmem>>, vector<1x1x4x256xf32>,
    %7 = vector.extract_strided_slice %2 {offsets = [0, 256], sizes = [4, 256], strides = [1, 1]} : vector<8x1024xf32> to vector<4x256xf32>
    %c0_7 = arith.constant 0 : index
    %c1 = arith.constant 1 : index
    %c0_8 = arith.constant 0 : index
    %c0_9 = arith.constant 0 : index
    %8 = vector.load %arg3[%c0_7, %c1, %c0_8, %c0_9] : memref<2x4x4x256xf32, #tpu.memory_space<vmem>>, vector<1x1x4x256xf32>
    %9 = vector.shape_cast %8 : vector<1x1x4x256xf32> to vector<4x256xf32>
    %10 = vector.shape_cast %7 : vector<4x256xf32> to vector<1x1x4x256xf32>
    tpu.vector_store %arg3[%c0_7, %c1, %c0_8, %c0_9], %10 {strides = array<i32>} : memref<2x4x4x256xf32, #tpu.memory_space<vmem>>, vector<1x1x4x256xf32>,
    %11 = vector.extract_strided_slice %2 {offsets = [0, 512], sizes = [4, 256], strides = [1, 1]} : vector<8x1024xf32> to vector<4x256xf32>
    %c0_10 = arith.constant 0 : index
    %c2 = arith.constant 2 : index
    %c0_11 = arith.constant 0 : index
    %c0_12 = arith.constant 0 : index
    %12 = vector.load %arg3[%c0_10, %c2, %c0_11, %c0_12] : memref<2x4x4x256xf32, #tpu.memory_space<vmem>>, vector<1x1x4x256xf32>
    %13 = vector.shape_cast %12 : vector<1x1x4x256xf32> to vector<4x256xf32>
    %14 = vector.shape_cast %11 : vector<4x256xf32> to vector<1x1x4x256xf32>
    tpu.vector_store %arg3[%c0_10, %c2, %c0_11, %c0_12], %14 {strides = array<i32>} : memref<2x4x4x256xf32, #tpu.memory_space<vmem>>, vector<1x1x4x256xf32>,
    %15 = vector.extract_strided_slice %2 {offsets = [0, 768], sizes = [4, 256], strides = [1, 1]} : vector<8x1024xf32> to vector<4x256xf32>
    %c0_13 = arith.constant 0 : index
    %c3 = arith.constant 3 : index
    %c0_14 = arith.constant 0 : index
    %c0_15 = arith.constant 0 : index
    %16 = vector.load %arg3[%c0_13, %c3, %c0_14, %c0_15] : memref<2x4x4x256xf32, #tpu.memory_space<vmem>>, vector<1x1x4x256xf32>
    %17 = vector.shape_cast %16 : vector<1x1x4x256xf32> to vector<4x256xf32>
    %18 = vector.shape_cast %15 : vector<4x256xf32> to vector<1x1x4x256xf32>
    tpu.vector_store %arg3[%c0_13, %c3, %c0_14, %c0_15], %18 {strides = array<i32>} : memref<2x4x4x256xf32, #tpu.memory_space<vmem>>, vector<1x1x4x256xf32>,
    %19 = vector.extract_strided_slice %2 {offsets = [4, 0], sizes = [4, 256], strides = [1, 1]} : vector<8x1024xf32> to vector<4x256xf32>
    %c1_16 = arith.constant 1 : index
    %c0_17 = arith.constant 0 : index
    %c0_18 = arith.constant 0 : index
    %c0_19 = arith.constant 0 : index
    %20 = vector.load %arg3[%c1_16, %c0_17, %c0_18, %c0_19] : memref<2x4x4x256xf32, #tpu.memory_space<vmem>>, vector<1x1x4x256xf32>
    %21 = vector.shape_cast %20 : vector<1x1x4x256xf32> to vector<4x256xf32>
    %22 = vector.shape_cast %19 : vector<4x256xf32> to vector<1x1x4x256xf32>
    tpu.vector_store %arg3[%c1_16, %c0_17, %c0_18, %c0_19], %22 {strides = array<i32>} : memref<2x4x4x256xf32, #tpu.memory_space<vmem>>, vector<1x1x4x256xf32>,
    %23 = vector.extract_strided_slice %2 {offsets = [4, 256], sizes = [4, 256], strides = [1, 1]} : vector<8x1024xf32> to vector<4x256xf32>
    %c1_20 = arith.constant 1 : index
    %c1_21 = arith.constant 1 : index
    %c0_22 = arith.constant 0 : index
    %c0_23 = arith.constant 0 : index
    %24 = vector.load %arg3[%c1_20, %c1_21, %c0_22, %c0_23] : memref<2x4x4x256xf32, #tpu.memory_space<vmem>>, vector<1x1x4x256xf32>
    %25 = vector.shape_cast %24 : vector<1x1x4x256xf32> to vector<4x256xf32>
    %26 = vector.shape_cast %23 : vector<4x256xf32> to vector<1x1x4x256xf32>
    tpu.vector_store %arg3[%c1_20, %c1_21, %c0_22, %c0_23], %26 {strides = array<i32>} : memref<2x4x4x256xf32, #tpu.memory_space<vmem>>, vector<1x1x4x256xf32>,
    %27 = vector.extract_strided_slice %2 {offsets = [4, 512], sizes = [4, 256], strides = [1, 1]} : vector<8x1024xf32> to vector<4x256xf32>
    %c1_24 = arith.constant 1 : index
    %c2_25 = arith.constant 2 : index
    %c0_26 = arith.constant 0 : index
    %c0_27 = arith.constant 0 : index
    %28 = vector.load %arg3[%c1_24, %c2_25, %c0_26, %c0_27] : memref<2x4x4x256xf32, #tpu.memory_space<vmem>>, vector<1x1x4x256xf32>
    %29 = vector.shape_cast %28 : vector<1x1x4x256xf32> to vector<4x256xf32>
    %30 = vector.shape_cast %27 : vector<4x256xf32> to vector<1x1x4x256xf32>
    tpu.vector_store %arg3[%c1_24, %c2_25, %c0_26, %c0_27], %30 {strides = array<i32>} : memref<2x4x4x256xf32, #tpu.memory_space<vmem>>, vector<1x1x4x256xf32>,
    %31 = vector.extract_strided_slice %2 {offsets = [4, 768], sizes = [4, 256], strides = [1, 1]} : vector<8x1024xf32> to vector<4x256xf32>
    %c1_28 = arith.constant 1 : index
    %c3_29 = arith.constant 3 : index
    %c0_30 = arith.constant 0 : index
    %c0_31 = arith.constant 0 : index
    %32 = vector.load %arg3[%c1_28, %c3_29, %c0_30, %c0_31] : memref<2x4x4x256xf32, #tpu.memory_space<vmem>>, vector<1x1x4x256xf32>
    %33 = vector.shape_cast %32 : vector<1x1x4x256xf32> to vector<4x256xf32>
    %34 = vector.shape_cast %31 : vector<4x256xf32> to vector<1x1x4x256xf32>
    tpu.vector_store %arg3[%c1_28, %c3_29, %c0_30, %c0_31], %34 {strides = array<i32>} : memref<2x4x4x256xf32, #tpu.memory_space<vmem>>, vector<1x1x4x256xf32>,
    return
  }
  func.func @transform_0(%arg0: i32) -> (i32, i32) {
    %c0_i32 = arith.constant 0 : i32
    %c0_i32_0 = arith.constant 0 : i32
    %c0_i32_1 = arith.constant 0 : i32
    return %c0_i32, %c0_i32_0 : i32, i32
  }
  func.func @transform_1(%arg0: i32) -> (i32, i32) {
    %c0_i32 = arith.constant 0 : i32
    %c0_i32_0 = arith.constant 0 : i32
    return %arg0, %c0_i32 : i32, i32
  }
  func.func @transform_2(%arg0: i32) -> (i32, i32, i32, i32) {
    %c0_i32 = arith.constant 0 : i32
    %c0_i32_0 = arith.constant 0 : i32
    %c0_i32_1 = arith.constant 0 : i32
    %c0_i32_2 = arith.constant 0 : i32
    return %arg0, %c0_i32, %c0_i32_0, %c0_i32_1 : i32, i32, i32, i32
  }
}

</mosaic_0001>

<bundles_post_ra>
// kernel: tpu_custom_call.1
= control target key start
LH: loop header
LB: loop body
LE: loop exit
PB: predicated region body
PF: predicated region fallthrough
CT: control target
= control target key end

     0   :  { %7 = vsyncpa [#allocation3], 0  ;;  %s1042_s0 = inlined_call_operand.hbm [shape: f32[256,1024], index: 0, kind: input, shape index: {}]   ;;  %s1043_s1 = inlined_call_operand.hbm [shape: f32[8,256], index: 1, kind: input, shape index: {}]   ;;  %s1044_s2 = inlined_call_operand.hbm [shape: f32[2,4,4,256], index: 2, kind: output, shape index: {}]  }
   0x1   :  { %8 = vsyncpa [#allocation6], 0 }
   0x2   :  { %9 = vsyncpa [#allocation4], 0  ;;  %s972_s9 = smov [#allocation2]   ;;  %s900_s13 = scalar_lea.hbm %s1042_s0, 32768 }
   0x3   :  { %s15_s10 = sshll.u32 %s972_s9, 4  ;;  %p901_p0 = scmp.ne.s32.totalorder %s1042_s0, %s900_s13  ;;  %s16_s10 = int_to_ptr.vmem [resolvable:$true] %s15_s10 }
   0x4   :  { %p904_p1 = scmp.lt.u32.totalorder %s900_s13, %s1042_s0 }
   0x6   :  { %p906_p2 = pnand %p904_p1, %p901_p0 }
   0x8   :  { %909 = shalt.err (!%p906_p2)
}
   0x9   :  { %s910_s18 = scalar_lea.vmem %s16_s10, 32768  ;;  %p915_p4 = scmp.lt.s32.totalorder %s16_s10, %s16_s10 }
   0xa   :  { %p911_p3 = scmp.ne.s32.totalorder %s16_s10, %s910_s18  ;;  %p916_p5 = scmp.lt.s32.totalorder %s910_s18, %s910_s18 }
   0xc   :  { %p917_p6 = por %p916_p5, %p915_p4 }
   0xe   :  { %p918_p7 = pnand %p917_p6, %p911_p3 }
  0x10   :  { %921 = shalt.err (!%p918_p7)
}
  0x11   :  { %s973_s19 = smov 1024   ;;  %s974_s20 = smov 64  }
  0x12   :  { %21 = dma.hbm_to_vmem [thread:$0]  %s1042_s0, 32768, %s16_s10, [#allocation3], %s973_s19, %s973_s19, %s974_s20  }
  0x13   :  { %s975_s23 = smov [#allocation5]   ;;  %s922_s27 = scalar_lea.hbm %s1043_s1, 256 }
  0x14   :  { %s28_s24 = sshll.u32 %s975_s23, 4  ;;  %p923_p8 = scmp.ne.s32.totalorder %s1043_s1, %s922_s27  ;;  %s29_s24 = int_to_ptr.vmem [resolvable:$true] %s28_s24 }
  0x15   :  { %p926_p9 = scmp.lt.u32.totalorder %s922_s27, %s1043_s1 }
  0x17   :  { %p928_p10 = pnand %p926_p9, %p923_p8 }
  0x19   :  { %931 = shalt.err (!%p928_p10)
}
  0x1a   :  { %s932_s4 = scalar_lea.vmem %s29_s24, 256  ;;  %p937_p12 = scmp.lt.s32.totalorder %s29_s24, %s29_s24 }
  0x1b   :  { %p933_p11 = scmp.ne.s32.totalorder %s29_s24, %s932_s4  ;;  %p938_p13 = scmp.lt.s32.totalorder %s932_s4, %s932_s4 }
  0x1d   :  { %p939_p0 = por %p938_p13, %p937_p12 }
  0x1f   :  { %p940_p1 = pnand %p939_p0, %p933_p11 }
  0x21   :  { %943 = shalt.err (!%p940_p1)
}
  0x22   :  { %31 = dma.hbm_to_vmem [thread:$0]  %s1043_s1, 256, %s29_s24, [#allocation6]  }
  0x23   :  { %966 = dma.done.wait [#allocation3], 32768  }
  0x24   :  { %967 = vsyncadd [#allocation3], 4294934528 }
  0x25   :  { %968 = dma.done.wait [#allocation6], 256  }
  0x26   :  { %969 = vsyncadd [#allocation6], 4294967040  ;;  %v41_v0 = vld [vmem:[#allocation2 + $0x8] sm:$0xff]  ;;  %v43_v2 = vld [vmem:[#allocation2 + $0x18] sm:$0xff]  ;;  %s976_s1 = smov [#allocation7]  }
  0x27   :  { %v49_v1 = vld [vmem:[#allocation2 + $0x48] sm:$0xff]  ;;  %v51_v4 = vld [vmem:[#allocation2 + $0x58] sm:$0xff]  ;;  %v40_v5 = vld [vmem:[#allocation2] sm:$0xff]  ;;  %s624_s6 = sshll.u32 %s976_s1, 4  ;;  %s625_s6 = int_to_ptr.vmem [resolvable:$true] %s624_s6 }
  0x28   :  { %v637_v3 = vpack.c.bf16 %v49_v1, %v41_v0  ;;  %v48_v6 = vld [vmem:[#allocation2 + $0x40] sm:$0xff]  ;;  %v701_v7 = vpack.c.bf16 %v51_v4, %v43_v2  ;;  %v42_v9 = vld [vmem:[#allocation2 + $0x10] sm:$0xff]  ;;  %v57_v11 = vld [vmem:[#allocation2 + $0x88] sm:$0xff]  ;;  %s944_s7 = scalar_lea.vmem %s625_s6, 1024  ;;  %p949_p3 = scmp.lt.s32.totalorder %s625_s6, %s625_s6 }
  0x29   :  { %v639_v8 = vpack.c.bf16 %v48_v6, %v40_v5  ;;  %v50_v10 = vld [vmem:[#allocation2 + $0x50] sm:$0xff]  ;;  %v65_v13 = vld [vmem:[#allocation2 + $0xc8] sm:$0xff]  ;;  %v59_v14 = vld [vmem:[#allocation2 + $0x98] sm:$0xff]  ;;  %p945_p2 = scmp.ne.s32.totalorder %s625_s6, %s944_s7  ;;  %p950_p4 = scmp.lt.s32.totalorder %s944_s7, %s944_s7 }
  0x2a   :  { %638 = vmatprep.subr.bf16.mxu0 %v637_v3  ;;  %v703_v12 = vpack.c.bf16 %v50_v10, %v42_v9  ;;  %v67_v15 = vld [vmem:[#allocation2 + $0xd8] sm:$0xff]  ;;  %702 = vmatprep.subr.bf16.mxu1 %v701_v7  ;;  %v641_v16 = vpack.c.bf16 %v65_v13, %v57_v11  ;;  %v56_v18 = vld [vmem:[#allocation2 + $0x80] sm:$0xff]  ;;  %v58_v20 = vld [vmem:[#allocation2 + $0x90] sm:$0xff] }
  0x2b   :  { %640 = vmatpush1.bf16.msra.mxu0 %v639_v8  ;;  %v705_v17 = vpack.c.bf16 %v67_v15, %v59_v14  ;;  %v64_v19 = vld [vmem:[#allocation2 + $0xc0] sm:$0xff]  ;;  %v66_v22 = vld [vmem:[#allocation2 + $0xd0] sm:$0xff]  ;;  %v73_v23 = vld [vmem:[#allocation2 + $0x108] sm:$0xff]  ;;  %p951_p5 = por %p950_p4, %p949_p3 }
  0x2c   :  { %704 = vmatpush1.bf16.msra.mxu1 %v703_v12  ;;  %v643_v21 = vpack.c.bf16 %v64_v19, %v56_v18  ;;  %v81_v24 = vld [vmem:[#allocation2 + $0x148] sm:$0xff]  ;;  %642 = vmatprep.subr.bf16.mxu0 %v641_v16  ;;  %v707_v25 = vpack.c.bf16 %v66_v22, %v58_v20  ;;  %v75_v27 = vld [vmem:[#allocation2 + $0x118] sm:$0xff]  ;;  %v72_v29 = vld [vmem:[#allocation2 + $0x100] sm:$0xff] }
  0x2d   :  { %706 = vmatprep.subr.bf16.mxu1 %v705_v17  ;;  %v645_v26 = vpack.c.bf16 %v81_v24, %v73_v23  ;;  %v83_v28 = vld [vmem:[#allocation2 + $0x158] sm:$0xff]  ;;  %v80_v31 = vld [vmem:[#allocation2 + $0x140] sm:$0xff]  ;;  %v74_v32 = vld [vmem:[#allocation2 + $0x110] sm:$0xff]  ;;  %p952_p6 = pnand %p951_p5, %p945_p2 }
  0x2e   :  { %v709_v30 = vpack.c.bf16 %v83_v28, %v75_v27  ;;  %v82_v33 = vld [vmem:[#allocation2 + $0x150] sm:$0xff]  ;;  %v647_v34 = vpack.c.bf16 %v80_v31, %v72_v29  ;;  %v89_v35 = vld [vmem:[#allocation2 + $0x188] sm:$0xff]  ;;  %v91_v37 = vld [vmem:[#allocation2 + $0x198] sm:$0xff] }
  0x2f   :  { %644 = vmatpush1.bf16.msra.mxu0 %v643_v21  ;;  %v97_v36 = vld [vmem:[#allocation2 + $0x1c8] sm:$0xff]  ;;  %v711_v38 = vpack.c.bf16 %v82_v33, %v74_v32  ;;  %v99_v40 = vld [vmem:[#allocation2 + $0x1d8] sm:$0xff]  ;;  %v88_v41 = vld [vmem:[#allocation2 + $0x180] sm:$0xff] }
  0x30   :  { %708 = vmatpush1.bf16.msra.mxu1 %v707_v25  ;;  %646 = vmatprep.subr.bf16.mxu0 %v645_v26  ;;  %v649_v39 = vpack.c.bf16 %v97_v36, %v89_v35  ;;  %v96_v42 = vld [vmem:[#allocation2 + $0x1c0] sm:$0xff]  ;;  %v713_v43 = vpack.c.bf16 %v99_v40, %v91_v37  ;;  %v90_v44 = vld [vmem:[#allocation2 + $0x190] sm:$0xff]  ;;  %v105_v46 = vld [vmem:[#allocation2 + $0x208] sm:$0xff] }
  0x31   :  { %710 = vmatprep.subr.bf16.mxu1 %v709_v30  ;;  %v98_v45 = vld [vmem:[#allocation2 + $0x1d0] sm:$0xff]  ;;  %v113_v47 = vld [vmem:[#allocation2 + $0x248] sm:$0xff]  ;;  %v107_v48 = vld [vmem:[#allocation2 + $0x218] sm:$0xff]  ;;  %v651_v50 = vpack.c.bf16 %v96_v42, %v88_v41 }
  0x32   :  { %v115_v49 = vld [vmem:[#allocation2 + $0x258] sm:$0xff]  ;;  %v715_v51 = vpack.c.bf16 %v98_v45, %v90_v44  ;;  %v653_v52 = vpack.c.bf16 %v113_v47, %v105_v46  ;;  %v104_v53 = vld [vmem:[#allocation2 + $0x200] sm:$0xff]  ;;  %v106_v55 = vld [vmem:[#allocation2 + $0x210] sm:$0xff] }
  0x33   :  { %648 = vmatpush1.bf16.msra.mxu0 %v647_v34  ;;  %v112_v54 = vld [vmem:[#allocation2 + $0x240] sm:$0xff]  ;;  %v717_v56 = vpack.c.bf16 %v115_v49, %v107_v48  ;;  %v114_v57 = vld [vmem:[#allocation2 + $0x250] sm:$0xff]  ;;  %v121_v58 = vld [vmem:[#allocation2 + $0x288] sm:$0xff] }
  0x34   :  { %712 = vmatpush1.bf16.msra.mxu1 %v711_v38  ;;  %650 = vmatprep.subr.bf16.mxu0 %v649_v39  ;;  %v129_v59 = vld [vmem:[#allocation2 + $0x2c8] sm:$0xff]  ;;  %v123_v60 = vld [vmem:[#allocation2 + $0x298] sm:$0xff]  ;;  %v655_v62 = vpack.c.bf16 %v112_v54, %v104_v53  ;;  %v719_v63 = vpack.c.bf16 %v114_v57, %v106_v55  ;;  %v120_v1 = vld [vmem:[#allocation2 + $0x280] sm:$0xff] }
  0x35   :  { %714 = vmatprep.subr.bf16.mxu1 %v713_v43  ;;  %v131_v61 = vld [vmem:[#allocation2 + $0x2d8] sm:$0xff]  ;;  %v657_v0 = vpack.c.bf16 %v129_v59, %v121_v58  ;;  %v128_v2 = vld [vmem:[#allocation2 + $0x2c0] sm:$0xff]  ;;  %v122_v3 = vld [vmem:[#allocation2 + $0x290] sm:$0xff] }
  0x36   :  { %v721_v4 = vpack.c.bf16 %v131_v61, %v123_v60  ;;  %v130_v5 = vld [vmem:[#allocation2 + $0x2d0] sm:$0xff]  ;;  %v137_v6 = vld [vmem:[#allocation2 + $0x308] sm:$0xff]  ;;  %v139_v8 = vld [vmem:[#allocation2 + $0x318] sm:$0xff]  ;;  %v659_v10 = vpack.c.bf16 %v128_v2, %v120_v1 }
  0x37   :  { %652 = vmatpush1.bf16.msra.mxu0 %v651_v50  ;;  %v145_v7 = vld [vmem:[#allocation2 + $0x348] sm:$0xff]  ;;  %v147_v9 = vld [vmem:[#allocation2 + $0x358] sm:$0xff]  ;;  %v723_v11 = vpack.c.bf16 %v130_v5, %v122_v3  ;;  %v136_v13 = vld [vmem:[#allocation2 + $0x300] sm:$0xff] }
  0x38   :  { %716 = vmatpush1.bf16.msra.mxu1 %v715_v51  ;;  %654 = vmatprep.subr.bf16.mxu0 %v653_v52  ;;  %v661_v12 = vpack.c.bf16 %v145_v7, %v137_v6  ;;  %v144_v14 = vld [vmem:[#allocation2 + $0x340] sm:$0xff]  ;;  %v138_v15 = vld [vmem:[#allocation2 + $0x310] sm:$0xff]  ;;  %v725_v16 = vpack.c.bf16 %v147_v9, %v139_v8  ;;  %v153_v18 = vld [vmem:[#allocation2 + $0x388] sm:$0xff] }
  0x39   :  { %718 = vmatprep.subr.bf16.mxu1 %v717_v56  ;;  %v146_v17 = vld [vmem:[#allocation2 + $0x350] sm:$0xff]  ;;  %v161_v19 = vld [vmem:[#allocation2 + $0x3c8] sm:$0xff]  ;;  %v155_v20 = vld [vmem:[#allocation2 + $0x398] sm:$0xff]  ;;  %v663_v22 = vpack.c.bf16 %v144_v14, %v136_v13 }
  0x3a   :  { %v163_v21 = vld [vmem:[#allocation2 + $0x3d8] sm:$0xff]  ;;  %v727_v23 = vpack.c.bf16 %v146_v17, %v138_v15  ;;  %v665_v24 = vpack.c.bf16 %v161_v19, %v153_v18  ;;  %v152_v25 = vld [vmem:[#allocation2 + $0x380] sm:$0xff]  ;;  %v154_v27 = vld [vmem:[#allocation2 + $0x390] sm:$0xff] }
  0x3b   :  { %656 = vmatpush1.bf16.msra.mxu0 %v655_v62  ;;  %v160_v26 = vld [vmem:[#allocation2 + $0x3c0] sm:$0xff]  ;;  %v729_v28 = vpack.c.bf16 %v163_v21, %v155_v20  ;;  %v162_v29 = vld [vmem:[#allocation2 + $0x3d0] sm:$0xff]  ;;  %v169_v30 = vld [vmem:[#allocation2 + $0x408] sm:$0xff] }
  0x3c   :  { %720 = vmatpush1.bf16.msra.mxu1 %v719_v63  ;;  %658 = vmatprep.subr.bf16.mxu0 %v657_v0  ;;  %v177_v31 = vld [vmem:[#allocation2 + $0x448] sm:$0xff]  ;;  %v171_v32 = vld [vmem:[#allocation2 + $0x418] sm:$0xff]  ;;  %v667_v34 = vpack.c.bf16 %v160_v26, %v152_v25  ;;  %v731_v35 = vpack.c.bf16 %v162_v29, %v154_v27  ;;  %v168_v37 = vld [vmem:[#allocation2 + $0x400] sm:$0xff] }
  0x3d   :  { %722 = vmatprep.subr.bf16.mxu1 %v721_v4  ;;  %v179_v33 = vld [vmem:[#allocation2 + $0x458] sm:$0xff]  ;;  %v669_v36 = vpack.c.bf16 %v177_v31, %v169_v30  ;;  %v176_v38 = vld [vmem:[#allocation2 + $0x440] sm:$0xff]  ;;  %v170_v39 = vld [vmem:[#allocation2 + $0x410] sm:$0xff] }
  0x3e   :  { %v733_v40 = vpack.c.bf16 %v179_v33, %v171_v32  ;;  %v178_v41 = vld [vmem:[#allocation2 + $0x450] sm:$0xff]  ;;  %v185_v42 = vld [vmem:[#allocation2 + $0x488] sm:$0xff]  ;;  %v187_v44 = vld [vmem:[#allocation2 + $0x498] sm:$0xff]  ;;  %v671_v46 = vpack.c.bf16 %v176_v38, %v168_v37 }
  0x3f   :  { %660 = vmatpush1.bf16.msra.mxu0 %v659_v10  ;;  %v193_v43 = vld [vmem:[#allocation2 + $0x4c8] sm:$0xff]  ;;  %v195_v45 = vld [vmem:[#allocation2 + $0x4d8] sm:$0xff]  ;;  %v735_v47 = vpack.c.bf16 %v178_v41, %v170_v39  ;;  %v184_v49 = vld [vmem:[#allocation2 + $0x480] sm:$0xff] }
  0x40   :  { %724 = vmatpush1.bf16.msra.mxu1 %v723_v11  ;;  %662 = vmatprep.subr.bf16.mxu0 %v661_v12  ;;  %v673_v48 = vpack.c.bf16 %v193_v43, %v185_v42  ;;  %v192_v50 = vld [vmem:[#allocation2 + $0x4c0] sm:$0xff]  ;;  %v186_v51 = vld [vmem:[#allocation2 + $0x490] sm:$0xff]  ;;  %v737_v52 = vpack.c.bf16 %v195_v45, %v187_v44  ;;  %v201_v54 = vld [vmem:[#allocation2 + $0x508] sm:$0xff] }
  0x41   :  { %726 = vmatprep.subr.bf16.mxu1 %v725_v16  ;;  %v194_v53 = vld [vmem:[#allocation2 + $0x4d0] sm:$0xff]  ;;  %v209_v55 = vld [vmem:[#allocation2 + $0x548] sm:$0xff]  ;;  %v203_v56 = vld [vmem:[#allocation2 + $0x518] sm:$0xff]  ;;  %v675_v58 = vpack.c.bf16 %v192_v50, %v184_v49 }
  0x42   :  { %v211_v57 = vld [vmem:[#allocation2 + $0x558] sm:$0xff]  ;;  %v739_v59 = vpack.c.bf16 %v194_v53, %v186_v51  ;;  %v677_v60 = vpack.c.bf16 %v209_v55, %v201_v54  ;;  %v200_v61 = vld [vmem:[#allocation2 + $0x500] sm:$0xff]  ;;  %v202_v63 = vld [vmem:[#allocation2 + $0x510] sm:$0xff] }
  0x43   :  { %664 = vmatpush1.bf16.msra.mxu0 %v663_v22  ;;  %v208_v62 = vld [vmem:[#allocation2 + $0x540] sm:$0xff]  ;;  %v741_v0 = vpack.c.bf16 %v211_v57, %v203_v56  ;;  %v210_v1 = vld [vmem:[#allocation2 + $0x550] sm:$0xff]  ;;  %v217_v2 = vld [vmem:[#allocation2 + $0x588] sm:$0xff] }
  0x44   :  { %728 = vmatpush1.bf16.msra.mxu1 %v727_v23  ;;  %666 = vmatprep.subr.bf16.mxu0 %v665_v24  ;;  %v225_v3 = vld [vmem:[#allocation2 + $0x5c8] sm:$0xff]  ;;  %v219_v4 = vld [vmem:[#allocation2 + $0x598] sm:$0xff]  ;;  %v679_v6 = vpack.c.bf16 %v208_v62, %v200_v61  ;;  %v216_v7 = vld [vmem:[#allocation2 + $0x580] sm:$0xff]  ;;  %v743_v8 = vpack.c.bf16 %v210_v1, %v202_v63 }
  0x45   :  { %730 = vmatprep.subr.bf16.mxu1 %v729_v28  ;;  %v227_v5 = vld [vmem:[#allocation2 + $0x5d8] sm:$0xff]  ;;  %v681_v9 = vpack.c.bf16 %v225_v3, %v217_v2  ;;  %v224_v10 = vld [vmem:[#allocation2 + $0x5c0] sm:$0xff]  ;;  %v218_v11 = vld [vmem:[#allocation2 + $0x590] sm:$0xff] }
  0x46   :  { %v226_v12 = vld [vmem:[#allocation2 + $0x5d0] sm:$0xff]  ;;  %v745_v13 = vpack.c.bf16 %v227_v5, %v219_v4  ;;  %v233_v14 = vld [vmem:[#allocation2 + $0x608] sm:$0xff]  ;;  %v235_v17 = vld [vmem:[#allocation2 + $0x618] sm:$0xff]  ;;  %v683_v19 = vpack.c.bf16 %v224_v10, %v216_v7 }
  0x47   :  { %668 = vmatpush1.bf16.msra.mxu0 %v667_v34  ;;  %v241_v15 = vld [vmem:[#allocation2 + $0x648] sm:$0xff]  ;;  %v243_v18 = vld [vmem:[#allocation2 + $0x658] sm:$0xff]  ;;  %v747_v20 = vpack.c.bf16 %v226_v12, %v218_v11  ;;  %v232_v22 = vld [vmem:[#allocation2 + $0x600] sm:$0xff] }
  0x48   :  { %732 = vmatpush1.bf16.msra.mxu1 %v731_v35  ;;  %670 = vmatprep.subr.bf16.mxu0 %v669_v36  ;;  %v1018_v16 = vld [vmem:[#allocation5 + $0x8] sm:$0xff]  ;;  %v685_v21 = vpack.c.bf16 %v241_v15, %v233_v14  ;;  %v240_v23 = vld [vmem:[#allocation2 + $0x640] sm:$0xff]  ;;  %v234_v24 = vld [vmem:[#allocation2 + $0x610] sm:$0xff]  ;;  %v749_v25 = vpack.c.bf16 %v243_v18, %v235_v17 }
  0x49   :  { %734 = vmatprep.subr.bf16.mxu1 %v733_v40  ;;  %360 = vmatprep.mubr.f32.mxu0 %v1018_v16  ;;  %v242_v26 = vld [vmem:[#allocation2 + $0x650] sm:$0xff]  ;;  %v249_v27 = vld [vmem:[#allocation2 + $0x688] sm:$0xff]  ;;  %v251_v29 = vld [vmem:[#allocation2 + $0x698] sm:$0xff]  ;;  %v687_v31 = vpack.c.bf16 %v240_v23, %v232_v22 }
  0x4a   :  { %431 = vmatprep.mubr.f32.mxu1 %v1018_v16  ;;  %v257_v28 = vld [vmem:[#allocation2 + $0x6c8] sm:$0xff]  ;;  %v259_v30 = vld [vmem:[#allocation2 + $0x6d8] sm:$0xff]  ;;  %v751_v32 = vpack.c.bf16 %v242_v26, %v234_v24  ;;  %v248_v34 = vld [vmem:[#allocation2 + $0x680] sm:$0xff] }
  0x4b   :  { %672 = vmatpush1.bf16.msra.mxu0 %v671_v46  ;;  %v689_v33 = vpack.c.bf16 %v257_v28, %v249_v27  ;;  %v256_v35 = vld [vmem:[#allocation2 + $0x6c0] sm:$0xff]  ;;  %v250_v36 = vld [vmem:[#allocation2 + $0x690] sm:$0xff]  ;;  %v753_v37 = vpack.c.bf16 %v259_v30, %v251_v29  ;;  %v265_v39 = vld [vmem:[#allocation2 + $0x708] sm:$0xff] }
  0x4c   :  { %736 = vmatpush1.bf16.msra.mxu1 %v735_v47  ;;  %674 = vmatprep.subr.bf16.mxu0 %v673_v48  ;;  %v258_v38 = vld [vmem:[#allocation2 + $0x6d0] sm:$0xff]  ;;  %v273_v40 = vld [vmem:[#allocation2 + $0x748] sm:$0xff]  ;;  %v267_v41 = vld [vmem:[#allocation2 + $0x718] sm:$0xff]  ;;  %v691_v43 = vpack.c.bf16 %v256_v35, %v248_v34 }
  0x4d   :  { %738 = vmatprep.subr.bf16.mxu1 %v737_v52  ;;  %v275_v42 = vld [vmem:[#allocation2 + $0x758] sm:$0xff]  ;;  %v755_v44 = vpack.c.bf16 %v258_v38, %v250_v36  ;;  %v693_v45 = vpack.c.bf16 %v273_v40, %v265_v39  ;;  %v264_v46 = vld [vmem:[#allocation2 + $0x700] sm:$0xff]  ;;  %v266_v48 = vld [vmem:[#allocation2 + $0x710] sm:$0xff] }
  0x4e   :  { %v272_v47 = vld [vmem:[#allocation2 + $0x740] sm:$0xff]  ;;  %v757_v49 = vpack.c.bf16 %v275_v42, %v267_v41  ;;  %v274_v50 = vld [vmem:[#allocation2 + $0x750] sm:$0xff]  ;;  %v281_v51 = vld [vmem:[#allocation2 + $0x788] sm:$0xff] }
  0x4f   :  { %676 = vmatpush1.bf16.msra.mxu0 %v675_v58  ;;  %v289_v52 = vld [vmem:[#allocation2 + $0x7c8] sm:$0xff]  ;;  %v283_v53 = vld [vmem:[#allocation2 + $0x798] sm:$0xff]  ;;  %v695_v55 = vpack.c.bf16 %v272_v47, %v264_v46  ;;  %v759_v56 = vpack.c.bf16 %v274_v50, %v266_v48  ;;  %v280_v58 = vld [vmem:[#allocation2 + $0x780] sm:$0xff] }
  0x50   :  { %740 = vmatpush1.bf16.msra.mxu1 %v739_v59  ;;  %678 = vmatprep.subr.bf16.mxu0 %v677_v60  ;;  %v291_v54 = vld [vmem:[#allocation2 + $0x7d8] sm:$0xff]  ;;  %v697_v57 = vpack.c.bf16 %v289_v52, %v281_v51  ;;  %v288_v59 = vld [vmem:[#allocation2 + $0x7c0] sm:$0xff]  ;;  %v282_v60 = vld [vmem:[#allocation2 + $0x790] sm:$0xff] }
  0x51   :  { %742 = vmatprep.subr.bf16.mxu1 %v741_v0  ;;  %v761_v61 = vpack.c.bf16 %v291_v54, %v283_v53  ;;  %v290_v62 = vld [vmem:[#allocation2 + $0x7d0] sm:$0xff]  ;;  %v45_v63 = vld [vmem:[#allocation2 + $0x28] sm:$0xff]  ;;  %v47_v1 = vld [vmem:[#allocation2 + $0x38] sm:$0xff]  ;;  %v699_v3 = vpack.c.bf16 %v288_v59, %v280_v58 }
  0x52   :  { %v53_v0 = vld [vmem:[#allocation2 + $0x68] sm:$0xff]  ;;  %v55_v2 = vld [vmem:[#allocation2 + $0x78] sm:$0xff]  ;;  %v763_v4 = vpack.c.bf16 %v290_v62, %v282_v60  ;;  %v52_v7 = vld [vmem:[#allocation2 + $0x60] sm:$0xff] }
  0x53   :  { %680 = vmatpush1.bf16.msra.mxu0 %v679_v6  ;;  %v765_v5 = vpack.c.bf16 %v53_v0, %v45_v63  ;;  %v44_v6 = vld [vmem:[#allocation2 + $0x20] sm:$0xff]  ;;  %v54_v10 = vld [vmem:[#allocation2 + $0x70] sm:$0xff]  ;;  %v61_v11 = vld [vmem:[#allocation2 + $0xa8] sm:$0xff] }
  0x54   :  { %744 = vmatpush1.bf16.msra.mxu1 %v743_v8  ;;  %682 = vmatprep.subr.bf16.mxu0 %v681_v9  ;;  %v46_v8 = vld [vmem:[#allocation2 + $0x30] sm:$0xff]  ;;  %v829_v9 = vpack.c.bf16 %v55_v2, %v47_v1  ;;  %v69_v12 = vld [vmem:[#allocation2 + $0xe8] sm:$0xff]  ;;  %v71_v14 = vld [vmem:[#allocation2 + $0xf8] sm:$0xff]  ;;  %v767_v17 = vpack.c.bf16 %v52_v7, %v44_v6 }
  0x55   :  { %746 = vmatprep.subr.bf16.mxu1 %v745_v13  ;;  %v63_v13 = vld [vmem:[#allocation2 + $0xb8] sm:$0xff]  ;;  %v1022_v15 = vld [vmem:[#allocation5] sm:$0xff]  ;;  %v831_v18 = vpack.c.bf16 %v54_v10, %v46_v8  ;;  %v62_v22 = vld [vmem:[#allocation2 + $0xb0] sm:$0xff] }
  0x56   :  { %v833_v23 = vpack.c.bf16 %v71_v14, %v63_v13  ;;  %v70_v24 = vld [vmem:[#allocation2 + $0xf0] sm:$0xff]  ;;  %v85_v26 = vld [vmem:[#allocation2 + $0x168] sm:$0xff]  ;;  %v79_v27 = vld [vmem:[#allocation2 + $0x138] sm:$0xff] }
  0x57   :  { %684 = vmatpush1.bf16.msra.mxu0 %v683_v19  ;;  %v769_v19 = vpack.c.bf16 %v69_v12, %v61_v11  ;;  %v87_v28 = vld [vmem:[#allocation2 + $0x178] sm:$0xff]  ;;  %v835_v30 = vpack.c.bf16 %v70_v24, %v62_v22  ;;  %v78_v34 = vld [vmem:[#allocation2 + $0x130] sm:$0xff]  ;;  %v101_v38 = vld [vmem:[#allocation2 + $0x1e8] sm:$0xff] }
  0x58   :  { %748 = vmatpush1.bf16.msra.mxu1 %v747_v20  ;;  %686 = vmatprep.subr.bf16.mxu0 %v685_v21  ;;  %v60_v20 = vld [vmem:[#allocation2 + $0xa0] sm:$0xff]  ;;  %v837_v35 = vpack.c.bf16 %v87_v28, %v79_v27  ;;  %v86_v36 = vld [vmem:[#allocation2 + $0x170] sm:$0xff]  ;;  %v95_v39 = vld [vmem:[#allocation2 + $0x1b8] sm:$0xff] }
  0x59   :  { %750 = vmatprep.subr.bf16.mxu1 %v749_v25  ;;  %v68_v21 = vld [vmem:[#allocation2 + $0xe0] sm:$0xff]  ;;  %v77_v25 = vld [vmem:[#allocation2 + $0x128] sm:$0xff]  ;;  %v103_v40 = vld [vmem:[#allocation2 + $0x1f8] sm:$0xff]  ;;  %v839_v42 = vpack.c.bf16 %v86_v36, %v78_v34 }
  0x5a   :  { %v771_v29 = vpack.c.bf16 %v68_v21, %v60_v20  ;;  %v94_v46 = vld [vmem:[#allocation2 + $0x1b0] sm:$0xff]  ;;  %v841_v47 = vpack.c.bf16 %v103_v40, %v95_v39  ;;  %v117_v50 = vld [vmem:[#allocation2 + $0x268] sm:$0xff]  ;;  %v111_v51 = vld [vmem:[#allocation2 + $0x238] sm:$0xff] }
  0x5b   :  { %688 = vmatpush1.bf16.msra.mxu0 %v687_v31  ;;  %v773_v31 = vpack.c.bf16 %v85_v26, %v77_v25  ;;  %v102_v48 = vld [vmem:[#allocation2 + $0x1f0] sm:$0xff]  ;;  %v119_v52 = vld [vmem:[#allocation2 + $0x278] sm:$0xff]  ;;  %v125_v60 = vld [vmem:[#allocation2 + $0x2a8] sm:$0xff] }
  0x5c   :  { %752 = vmatpush1.bf16.msra.mxu1 %v751_v32  ;;  %690 = vmatprep.subr.bf16.mxu0 %v689_v33  ;;  %v76_v32 = vld [vmem:[#allocation2 + $0x120] sm:$0xff]  ;;  %v845_v58 = vpack.c.bf16 %v119_v52, %v111_v51  ;;  %v118_v59 = vld [vmem:[#allocation2 + $0x270] sm:$0xff]  ;;  %v127_v62 = vld [vmem:[#allocation2 + $0x2b8] sm:$0xff] }
  0x5d   :  { %754 = vmatprep.subr.bf16.mxu1 %v753_v37  ;;  %v84_v33 = vld [vmem:[#allocation2 + $0x160] sm:$0xff]  ;;  %v93_v37 = vld [vmem:[#allocation2 + $0x1a8] sm:$0xff]  ;;  %v135_v63 = vld [vmem:[#allocation2 + $0x2f8] sm:$0xff] }
  0x5e   :  { %v775_v41 = vpack.c.bf16 %v84_v33, %v76_v32  ;;  %v849_v6 = vpack.c.bf16 %v135_v63, %v127_v62  ;;  %v134_v7 = vld [vmem:[#allocation2 + $0x2f0] sm:$0xff]  ;;  %v141_v8 = vld [vmem:[#allocation2 + $0x328] sm:$0xff]  ;;  %v143_v10 = vld [vmem:[#allocation2 + $0x338] sm:$0xff] }
  0x5f   :  { %692 = vmatpush1.bf16.msra.mxu0 %v691_v43  ;;  %v777_v43 = vpack.c.bf16 %v101_v38, %v93_v37  ;;  %v151_v11 = vld [vmem:[#allocation2 + $0x378] sm:$0xff]  ;;  %v150_v21 = vld [vmem:[#allocation2 + $0x370] sm:$0xff]  ;;  %v157_v22 = vld [vmem:[#allocation2 + $0x3a8] sm:$0xff] }
  0x60   :  { %756 = vmatpush1.bf16.msra.mxu1 %v755_v44  ;;  %694 = vmatprep.subr.bf16.mxu0 %v693_v45  ;;  %v92_v44 = vld [vmem:[#allocation2 + $0x1a0] sm:$0xff]  ;;  %v853_v20 = vpack.c.bf16 %v151_v11, %v143_v10  ;;  %v159_v24 = vld [vmem:[#allocation2 + $0x3b8] sm:$0xff]  ;;  %v166_v33 = vld [vmem:[#allocation2 + $0x3f0] sm:$0xff] }
  0x61   :  { %758 = vmatprep.subr.bf16.mxu1 %v757_v49  ;;  %v100_v45 = vld [vmem:[#allocation2 + $0x1e0] sm:$0xff]  ;;  %v109_v49 = vld [vmem:[#allocation2 + $0x228] sm:$0xff]  ;;  %v167_v25 = vld [vmem:[#allocation2 + $0x3f8] sm:$0xff] }
  0x62   :  { %v779_v53 = vpack.c.bf16 %v100_v45, %v92_v44  ;;  %v781_v54 = vpack.c.bf16 %v117_v50, %v109_v49  ;;  %v857_v32 = vpack.c.bf16 %v167_v25, %v159_v24  ;;  %v173_v34 = vld [vmem:[#allocation2 + $0x428] sm:$0xff]  ;;  %v175_v36 = vld [vmem:[#allocation2 + $0x438] sm:$0xff]  ;;  %v182_v45 = vld [vmem:[#allocation2 + $0x470] sm:$0xff] }
  0x63   :  { %696 = vmatpush1.bf16.msra.mxu0 %v695_v55  ;;  %v108_v55 = vld [vmem:[#allocation2 + $0x220] sm:$0xff]  ;;  %v183_v37 = vld [vmem:[#allocation2 + $0x478] sm:$0xff] }
  0x64   :  { %760 = vmatpush1.bf16.msra.mxu1 %v759_v56  ;;  %698 = vmatprep.subr.bf16.mxu0 %v697_v57  ;;  %v116_v56 = vld [vmem:[#allocation2 + $0x260] sm:$0xff]  ;;  %v110_v57 = vld [vmem:[#allocation2 + $0x230] sm:$0xff]  ;;  %v861_v44 = vpack.c.bf16 %v183_v37, %v175_v36  ;;  %v199_v49 = vld [vmem:[#allocation2 + $0x4f8] sm:$0xff] }
  0x65   :  { %762 = vmatprep.subr.bf16.mxu1 %v761_v61  ;;  %v133_v61 = vld [vmem:[#allocation2 + $0x2e8] sm:$0xff]  ;;  %v783_v0 = vpack.c.bf16 %v116_v56, %v108_v55  ;;  %v847_v1 = vpack.c.bf16 %v118_v59, %v110_v57  ;;  %v198_v56 = vld [vmem:[#allocation2 + $0x4f0] sm:$0xff]  ;;  %v207_v59 = vld [vmem:[#allocation2 + $0x538] sm:$0xff] }
  0x66   :  { %v785_v2 = vpack.c.bf16 %v133_v61, %v125_v60  ;;  %v205_v57 = vld [vmem:[#allocation2 + $0x528] sm:$0xff]  ;;  %v215_v60 = vld [vmem:[#allocation2 + $0x578] sm:$0xff] }
  0x67   :  { %700 = vmatpush1.bf16.msra.mxu0 %v699_v3  ;;  %v124_v3 = vld [vmem:[#allocation2 + $0x2a0] sm:$0xff] }
  0x68   :  { %764 = vmatpush1.bf16.msra.mxu1 %v763_v4  ;;  %766 = vmatprep.subr.bf16.mxu0 %v765_v5  ;;  %v132_v4 = vld [vmem:[#allocation2 + $0x2e0] sm:$0xff]  ;;  %v126_v5 = vld [vmem:[#allocation2 + $0x2b0] sm:$0xff] }
  0x69   :  { %830 = vmatprep.subr.bf16.mxu1 %v829_v9  ;;  %v149_v9 = vld [vmem:[#allocation2 + $0x368] sm:$0xff]  ;;  %v787_v12 = vpack.c.bf16 %v132_v4, %v124_v3  ;;  %v851_v13 = vpack.c.bf16 %v134_v7, %v126_v5  ;;  %v869_v3 = vpack.c.bf16 %v215_v60, %v207_v59  ;;  %v214_v4 = vld [vmem:[#allocation2 + $0x570] sm:$0xff]  ;;  %v223_v7 = vld [vmem:[#allocation2 + $0x5b8] sm:$0xff] }
  0x6a   :  { %361 = vmatmul.mubr.f32.vlgmr.msra.gmra.mrb[0].mxu0 %v1022_v15  ;;  %v789_v14 = vpack.c.bf16 %v149_v9, %v141_v8  ;;  %v221_v5 = vld [vmem:[#allocation2 + $0x5a8] sm:$0xff]  ;;  %v231_v8 = vld [vmem:[#allocation2 + $0x5f8] sm:$0xff] }
  0x6b   :  { %432 = vmatmul.mubr.f32.vlgmr.msra.gmra.mrb[0].mxu1 %v1022_v15  ;;  %768 = vmatpush1.bf16.msra.mxu0 %v767_v17  ;;  %v140_v17 = vld [vmem:[#allocation2 + $0x320] sm:$0xff] }
  0x6c   :  { %832 = vmatpush1.bf16.msra.mxu1 %v831_v18  ;;  %770 = vmatprep.subr.bf16.mxu0 %v769_v19  ;;  %v148_v18 = vld [vmem:[#allocation2 + $0x360] sm:$0xff]  ;;  %v142_v19 = vld [vmem:[#allocation2 + $0x330] sm:$0xff] }
  0x6d   :  { %834 = vmatprep.subr.bf16.mxu1 %v833_v23  ;;  %502 = vmatprep.mubr.f32.mxu0 %v1018_v16  ;;  %v165_v23 = vld [vmem:[#allocation2 + $0x3e8] sm:$0xff]  ;;  %v791_v26 = vpack.c.bf16 %v148_v18, %v140_v17  ;;  %v855_v27 = vpack.c.bf16 %v150_v21, %v142_v19  ;;  %v873_v17 = vpack.c.bf16 %v231_v8, %v223_v7  ;;  %v230_v18 = vld [vmem:[#allocation2 + $0x5f0] sm:$0xff]  ;;  %v239_v21 = vld [vmem:[#allocation2 + $0x638] sm:$0xff] }
  0x6e   :  { %573 = vmatprep.mubr.f32.mxu1 %v1018_v16  ;;  %v843_v16 = vpack.c.bf16 %v102_v48, %v94_v46  ;;  %v793_v28 = vpack.c.bf16 %v165_v23, %v157_v22  ;;  %v189_v46 = vld [vmem:[#allocation2 + $0x4a8] sm:$0xff]  ;;  %v191_v48 = vld [vmem:[#allocation2 + $0x4b8] sm:$0xff] }
  0x6f   :  { %772 = vmatpush1.bf16.msra.mxu0 %v771_v29  ;;  %v156_v29 = vld [vmem:[#allocation2 + $0x3a0] sm:$0xff]  ;;  %v865_v55 = vpack.c.bf16 %v199_v49, %v191_v48  ;;  %v237_v19 = vld [vmem:[#allocation2 + $0x628] sm:$0xff]  ;;  %v247_v22 = vld [vmem:[#allocation2 + $0x678] sm:$0xff] }
  0x70   :  { %836 = vmatpush1.bf16.msra.mxu1 %v835_v30  ;;  %774 = vmatprep.subr.bf16.mxu0 %v773_v31  ;;  %v164_v30 = vld [vmem:[#allocation2 + $0x3e0] sm:$0xff]  ;;  %v158_v31 = vld [vmem:[#allocation2 + $0x3b0] sm:$0xff] }
  0x71   :  { %838 = vmatprep.subr.bf16.mxu1 %v837_v35  ;;  %v181_v35 = vld [vmem:[#allocation2 + $0x468] sm:$0xff]  ;;  %v795_v38 = vpack.c.bf16 %v164_v30, %v156_v29  ;;  %v859_v39 = vpack.c.bf16 %v166_v33, %v158_v31  ;;  %v877_v29 = vpack.c.bf16 %v247_v22, %v239_v21  ;;  %v246_v30 = vld [vmem:[#allocation2 + $0x670] sm:$0xff]  ;;  %v255_v33 = vld [vmem:[#allocation2 + $0x6b8] sm:$0xff] }
  0x72   :  { %v797_v40 = vpack.c.bf16 %v181_v35, %v173_v34  ;;  %v253_v31 = vld [vmem:[#allocation2 + $0x6a8] sm:$0xff]  ;;  %v263_v34 = vld [vmem:[#allocation2 + $0x6f8] sm:$0xff] }
  0x73   :  { %776 = vmatpush1.bf16.msra.mxu0 %v775_v41  ;;  %v172_v41 = vld [vmem:[#allocation2 + $0x420] sm:$0xff] }
  0x74   :  { %840 = vmatpush1.bf16.msra.mxu1 %v839_v42  ;;  %778 = vmatprep.subr.bf16.mxu0 %v777_v43  ;;  %v180_v42 = vld [vmem:[#allocation2 + $0x460] sm:$0xff]  ;;  %v174_v43 = vld [vmem:[#allocation2 + $0x430] sm:$0xff] }
  0x75   :  { %842 = vmatprep.subr.bf16.mxu1 %v841_v47  ;;  %v197_v47 = vld [vmem:[#allocation2 + $0x4e8] sm:$0xff]  ;;  %v799_v50 = vpack.c.bf16 %v180_v42, %v172_v41  ;;  %v863_v51 = vpack.c.bf16 %v182_v45, %v174_v43  ;;  %v881_v41 = vpack.c.bf16 %v263_v34, %v255_v33  ;;  %v262_v42 = vld [vmem:[#allocation2 + $0x6f0] sm:$0xff]  ;;  %v271_v45 = vld [vmem:[#allocation2 + $0x738] sm:$0xff] }
  0x76   :  { %v801_v52 = vpack.c.bf16 %v197_v47, %v189_v46  ;;  %v269_v43 = vld [vmem:[#allocation2 + $0x728] sm:$0xff]  ;;  %v279_v46 = vld [vmem:[#allocation2 + $0x778] sm:$0xff] }
  0x77   :  { %780 = vmatpush1.bf16.msra.mxu0 %v779_v53  ;;  %v188_v53 = vld [vmem:[#allocation2 + $0x4a0] sm:$0xff] }
  0x78   :  { %844 = vmatpush1.bf16.msra.mxu1 %v843_v16  ;;  %782 = vmatprep.subr.bf16.mxu0 %v781_v54  ;;  %v196_v16 = vld [vmem:[#allocation2 + $0x4e0] sm:$0xff]  ;;  %v190_v54 = vld [vmem:[#allocation2 + $0x4b0] sm:$0xff] }
  0x79   :  { %846 = vmatprep.subr.bf16.mxu1 %v845_v58  ;;  %v213_v58 = vld [vmem:[#allocation2 + $0x568] sm:$0xff]  ;;  %v803_v61 = vpack.c.bf16 %v196_v16, %v188_v53  ;;  %v867_v62 = vpack.c.bf16 %v198_v56, %v190_v54  ;;  %v885_v53 = vpack.c.bf16 %v279_v46, %v271_v45  ;;  %v278_v16 = vld [vmem:[#allocation2 + $0x770] sm:$0xff]  ;;  %v287_v56 = vld [vmem:[#allocation2 + $0x7b8] sm:$0xff] }
  0x7a   :  { %v805_v63 = vpack.c.bf16 %v213_v58, %v205_v57  ;;  %v285_v54 = vld [vmem:[#allocation2 + $0x7a8] sm:$0xff]  ;;  %v295_v57 = vld [vmem:[#allocation2 + $0x7f8] sm:$0xff] }
  0x7b   :  { %784 = vmatpush1.bf16.msra.mxu0 %v783_v0  ;;  %v204_v0 = vld [vmem:[#allocation2 + $0x520] sm:$0xff] }
  0x7c   :  { %848 = vmatpush1.bf16.msra.mxu1 %v847_v1  ;;  %786 = vmatprep.subr.bf16.mxu0 %v785_v2  ;;  %v212_v1 = vld [vmem:[#allocation2 + $0x560] sm:$0xff]  ;;  %v206_v2 = vld [vmem:[#allocation2 + $0x530] sm:$0xff] }
  0x7d   :  { %850 = vmatprep.subr.bf16.mxu1 %v849_v6  ;;  %v229_v6 = vld [vmem:[#allocation2 + $0x5e8] sm:$0xff]  ;;  %v807_v9 = vpack.c.bf16 %v212_v1, %v204_v0  ;;  %v871_v10 = vpack.c.bf16 %v214_v4, %v206_v2  ;;  %v286_v0 = vld [vmem:[#allocation2 + $0x7b0] sm:$0xff] }
  0x7e   :  { %v809_v11 = vpack.c.bf16 %v229_v6, %v221_v5  ;;  %v294_v1 = vld [vmem:[#allocation2 + $0x7f0] sm:$0xff] }
  0x7f   :  { %788 = vmatpush1.bf16.msra.mxu0 %v787_v12  ;;  %v220_v12 = vld [vmem:[#allocation2 + $0x5a0] sm:$0xff] }
  0x80   :  { %852 = vmatpush1.bf16.msra.mxu1 %v851_v13  ;;  %790 = vmatprep.subr.bf16.mxu0 %v789_v14  ;;  %v228_v13 = vld [vmem:[#allocation2 + $0x5e0] sm:$0xff]  ;;  %v222_v14 = vld [vmem:[#allocation2 + $0x5b0] sm:$0xff] }
  0x81   :  { %854 = vmatprep.subr.bf16.mxu1 %v853_v20  ;;  %v245_v20 = vld [vmem:[#allocation2 + $0x668] sm:$0xff]  ;;  %v811_v23 = vpack.c.bf16 %v228_v13, %v220_v12  ;;  %v875_v24 = vpack.c.bf16 %v230_v18, %v222_v14 }
  0x82   :  { %v813_v25 = vpack.c.bf16 %v245_v20, %v237_v19 }
  0x83   :  { %792 = vmatpush1.bf16.msra.mxu0 %v791_v26  ;;  %v236_v26 = vld [vmem:[#allocation2 + $0x620] sm:$0xff] }
  0x84   :  { %856 = vmatpush1.bf16.msra.mxu1 %v855_v27  ;;  %794 = vmatprep.subr.bf16.mxu0 %v793_v28  ;;  %v244_v27 = vld [vmem:[#allocation2 + $0x660] sm:$0xff]  ;;  %v238_v28 = vld [vmem:[#allocation2 + $0x630] sm:$0xff] }
  0x85   :  { %858 = vmatprep.subr.bf16.mxu1 %v857_v32  ;;  %v261_v32 = vld [vmem:[#allocation2 + $0x6e8] sm:$0xff]  ;;  %v815_v35 = vpack.c.bf16 %v244_v27, %v236_v26  ;;  %v879_v36 = vpack.c.bf16 %v246_v30, %v238_v28 }
  0x86   :  { %v817_v37 = vpack.c.bf16 %v261_v32, %v253_v31 }
  0x87   :  { %796 = vmatpush1.bf16.msra.mxu0 %v795_v38  ;;  %v252_v38 = vld [vmem:[#allocation2 + $0x6a0] sm:$0xff] }
  0x88   :  { %860 = vmatpush1.bf16.msra.mxu1 %v859_v39  ;;  %798 = vmatprep.subr.bf16.mxu0 %v797_v40  ;;  %v260_v39 = vld [vmem:[#allocation2 + $0x6e0] sm:$0xff]  ;;  %v254_v40 = vld [vmem:[#allocation2 + $0x6b0] sm:$0xff] }
  0x89   :  { %862 = vmatprep.subr.bf16.mxu1 %v861_v44  ;;  %v277_v44 = vld [vmem:[#allocation2 + $0x768] sm:$0xff]  ;;  %v819_v47 = vpack.c.bf16 %v260_v39, %v252_v38  ;;  %v883_v48 = vpack.c.bf16 %v262_v42, %v254_v40 }
  0x8a   :  { %v821_v49 = vpack.c.bf16 %v277_v44, %v269_v43 }
  0x8b   :  { %800 = vmatpush1.bf16.msra.mxu0 %v799_v50  ;;  %v268_v50 = vld [vmem:[#allocation2 + $0x720] sm:$0xff] }
  0x8c   :  { %864 = vmatpush1.bf16.msra.mxu1 %v863_v51  ;;  %802 = vmatprep.subr.bf16.mxu0 %v801_v52  ;;  %v276_v51 = vld [vmem:[#allocation2 + $0x760] sm:$0xff]  ;;  %v270_v52 = vld [vmem:[#allocation2 + $0x730] sm:$0xff] }
  0x8d   :  { %866 = vmatprep.subr.bf16.mxu1 %v865_v55  ;;  %v293_v55 = vld [vmem:[#allocation2 + $0x7e8] sm:$0xff]  ;;  %v823_v58 = vpack.c.bf16 %v276_v51, %v268_v50  ;;  %v887_v59 = vpack.c.bf16 %v278_v16, %v270_v52 }
  0x8e   :  { %v825_v60 = vpack.c.bf16 %v293_v55, %v285_v54 }
  0x8f   :  { %804 = vmatpush1.bf16.msra.mxu0 %v803_v61  ;;  %v284_v61 = vld [vmem:[#allocation2 + $0x7a0] sm:$0xff] }
  0x90   :  { %868 = vmatpush1.bf16.msra.mxu1 %v867_v62  ;;  %806 = vmatprep.subr.bf16.mxu0 %v805_v63  ;;  %v292_v62 = vld [vmem:[#allocation2 + $0x7e0] sm:$0xff]  ;;  %v889_v63 = vpack.c.bf16 %v295_v57, %v287_v56 }
  0x91   :  { %870 = vmatprep.subr.bf16.mxu1 %v869_v3  ;;  %v827_v2 = vpack.c.bf16 %v292_v62, %v284_v61  ;;  %v891_v3 = vpack.c.bf16 %v294_v1, %v286_v0 }
  0x93   :  { %808 = vmatpush1.bf16.msra.mxu0 %v807_v9 }
  0x94   :  { %872 = vmatpush1.bf16.msra.mxu1 %v871_v10  ;;  %810 = vmatprep.subr.bf16.mxu0 %v809_v11 }
  0x95   :  { %874 = vmatprep.subr.bf16.mxu1 %v873_v17 }
  0x97   :  { %812 = vmatpush1.bf16.msra.mxu0 %v811_v23 }
  0x98   :  { %876 = vmatpush1.bf16.msra.mxu1 %v875_v24  ;;  %814 = vmatprep.subr.bf16.mxu0 %v813_v25 }
  0x99   :  { %878 = vmatprep.subr.bf16.mxu1 %v877_v29 }
  0x9b   :  { %816 = vmatpush1.bf16.msra.mxu0 %v815_v35 }
  0x9c   :  { %880 = vmatpush1.bf16.msra.mxu1 %v879_v36  ;;  %818 = vmatprep.subr.bf16.mxu0 %v817_v37 }
  0x9d   :  { %882 = vmatprep.subr.bf16.mxu1 %v881_v41 }
  0x9f   :  { %820 = vmatpush1.bf16.msra.mxu0 %v819_v47 }
  0xa0   :  { %884 = vmatpush1.bf16.msra.mxu1 %v883_v48  ;;  %822 = vmatprep.subr.bf16.mxu0 %v821_v49 }
  0xa1   :  { %886 = vmatprep.subr.bf16.mxu1 %v885_v53 }
  0xa3   :  { %824 = vmatpush1.bf16.msra.mxu0 %v823_v58 }
  0xa4   :  { %888 = vmatpush1.bf16.msra.mxu1 %v887_v59  ;;  %826 = vmatprep.subr.bf16.mxu0 %v825_v60 }
  0xa5   :  { %890 = vmatprep.subr.bf16.mxu1 %v889_v63 }
  0xa7   :  { %828 = vmatpush1.bf16.msra.mxu0 %v827_v2 }
  0xa8   :  { %892 = vmatpush1.bf16.msra.mxu1 %v891_v3 }
  0xaa   :  { %503 = vmatmul.mubr.f32.vlgmr.msra.gmra.mrb[2].mxu0 %v1022_v15 }
  0xab   :  { %574 = vmatmul.mubr.f32.vlgmr.msra.gmra.mrb[2].mxu1 %v1022_v15 }
 0x13d   :  { %v362_v4 = vpop.f32.mrb[0].mxu0 }
 0x13e   :  { %v433_v5 = vpop.f32.mrb[0].mxu1  ;;  %v364_v6 = vpop.f32.mrb[1].mxu0 }
 0x13f   :  { %v582_v7 = vcombine.low %v362_v4, %v364_v6  ;;  %v603_v8 = vcombine.high %v362_v4, %v364_v6  ;;  %v435_v9 = vpop.f32.mrb[1].mxu1 }
 0x140   :  { %v587_v10 = vcombine.low %v433_v5, %v435_v9  ;;  %v607_v11 = vcombine.high %v433_v5, %v435_v9 }
 0x141   :  { %584 = vst [vmem:[#allocation7] sm:$0xff] %v582_v7  ;;  %606 = vst [vmem:[#allocation7 + $0x20] sm:$0xff] %v603_v8 }
 0x142   :  { %590 = vst [vmem:[#allocation7 + $0x8] sm:$0xff] %v587_v10  ;;  %610 = vst [vmem:[#allocation7 + $0x28] sm:$0xff] %v607_v11 }
 0x17d   :  { %v504_v12 = vpop.f32.mrb[2].mxu0 }
 0x17e   :  { %v575_v13 = vpop.f32.mrb[2].mxu1  ;;  %v506_v14 = vpop.f32.mrb[3].mxu0 }
 0x17f   :  { %v593_v17 = vcombine.low %v504_v12, %v506_v14  ;;  %v611_v18 = vcombine.high %v504_v12, %v506_v14  ;;  %v577_v15 = vpop.f32.mrb[3].mxu1 }
 0x180   :  { %v599_v19 = vcombine.low %v575_v13, %v577_v15  ;;  %v615_v20 = vcombine.high %v575_v13, %v577_v15 }
 0x181   :  { %596 = vst [vmem:[#allocation7 + $0x10] sm:$0xff] %v593_v17  ;;  %614 = vst [vmem:[#allocation7 + $0x30] sm:$0xff] %v611_v18 }
 0x182   :  { %602 = vst [vmem:[#allocation7 + $0x18] sm:$0xff] %v599_v19  ;;  %618 = vst [vmem:[#allocation7 + $0x38] sm:$0xff] %v615_v20 }
 0x183   :  { %955 = shalt.err (!%p952_p6)
}
 0x184   :  { %s956_s10 = scalar_lea.hbm %s1044_s2, 1024 }
 0x185   :  { %p957_p7 = scmp.ne.s32.totalorder %s1044_s2, %s956_s10  ;;  %p960_p8 = scmp.lt.u32.totalorder %s956_s10, %s1044_s2 }
 0x187   :  { %p962_p9 = pnand %p960_p8, %p957_p7 }
 0x189   :  { %965 = shalt.err (!%p962_p9)
}
 0x18a   :  { %s977_s15 = smov 128   ;;  %s978_s16 = smov 8  }
 0x18b   :  { %630 = dma.vmem_to_hbm [thread:$0]  %s625_s6, 1024, %s1044_s2, [#allocation4], %s977_s15, %s977_s15, %s978_s16  }
 0x18c   :  { %970 = dma.done.wait [#allocation4], 1024  }
 0x18d   :  { %971 = vsyncadd [#allocation4], 4294966272 }
 0x18e   :  { %634 = vsyncpa [#allocation3], 1 }
 0x18f   :  { %635 = vsyncpa [#allocation6], 1 }
 0x190   :  { %636 = vsyncpa [#allocation4], 1 }

// kernel: tpu_custom_call.1
= control target key start
LH: loop header
LB: loop body
LE: loop exit
PB: predicated region body
PF: predicated region fallthrough
CT: control target
= control target key end

     0   :  { %7 = vsyncpa [#allocation3], 0  ;;  %s1042_s0 = inlined_call_operand.hbm [shape: f32[256,1024], index: 0, kind: input, shape index: {}]   ;;  %s1043_s1 = inlined_call_operand.hbm [shape: f32[8,256], index: 1, kind: input, shape index: {}]   ;;  %s1044_s2 = inlined_call_operand.hbm [shape: f32[2,4,4,256], index: 2, kind: output, shape index: {}]  }
   0x1   :  { %8 = vsyncpa [#allocation6], 0 }
   0x2   :  { %9 = vsyncpa [#allocation4], 0  ;;  %s972_s9 = smov [#allocation2]   ;;  %s900_s13 = scalar_lea.hbm %s1042_s0, 32768 }
   0x3   :  { %s15_s10 = sshll.u32 %s972_s9, 4  ;;  %p901_p0 = scmp.ne.s32.totalorder %s1042_s0, %s900_s13  ;;  %s16_s10 = int_to_ptr.vmem [resolvable:$true] %s15_s10 }
   0x4   :  { %p904_p1 = scmp.lt.u32.totalorder %s900_s13, %s1042_s0 }
   0x6   :  { %p906_p2 = pnand %p904_p1, %p901_p0 }
   0x8   :  { %909 = shalt.err (!%p906_p2)
}
   0x9   :  { %s910_s18 = scalar_lea.vmem %s16_s10, 32768  ;;  %p915_p4 = scmp.lt.s32.totalorder %s16_s10, %s16_s10 }
   0xa   :  { %p911_p3 = scmp.ne.s32.totalorder %s16_s10, %s910_s18  ;;  %p916_p5 = scmp.lt.s32.totalorder %s910_s18, %s910_s18 }
   0xc   :  { %p917_p6 = por %p916_p5, %p915_p4 }
   0xe   :  { %p918_p7 = pnand %p917_p6, %p911_p3 }
  0x10   :  { %921 = shalt.err (!%p918_p7)
}
  0x11   :  { %s973_s19 = smov 1024   ;;  %s974_s20 = smov 64  }
  0x12   :  { %21 = dma.hbm_to_vmem [thread:$0]  %s1042_s0, 32768, %s16_s10, [#allocation3], %s973_s19, %s973_s19, %s974_s20  }
  0x13   :  { %s975_s23 = smov [#allocation5]   ;;  %s922_s27 = scalar_lea.hbm %s1043_s1, 256 }
  0x14   :  { %s28_s24 = sshll.u32 %s975_s23, 4  ;;  %p923_p8 = scmp.ne.s32.totalorder %s1043_s1, %s922_s27  ;;  %s29_s24 = int_to_ptr.vmem [resolvable:$true] %s28_s24 }
  0x15   :  { %p926_p9 = scmp.lt.u32.totalorder %s922_s27, %s1043_s1 }
  0x17   :  { %p928_p10 = pnand %p926_p9, %p923_p8 }
  0x19   :  { %931 = shalt.err (!%p928_p10)
}
  0x1a   :  { %s932_s4 = scalar_lea.vmem %s29_s24, 256  ;;  %p937_p12 = scmp.lt.s32.totalorder %s29_s24, %s29_s24 }
  0x1b   :  { %p933_p11 = scmp.ne.s32.totalorder %s29_s24, %s932_s4  ;;  %p938_p13 = scmp.lt.s32.totalorder %s932_s4, %s932_s4 }
  0x1d   :  { %p939_p0 = por %p938_p13, %p937_p12 }
  0x1f   :  { %p940_p1 = pnand %p939_p0, %p933_p11 }
  0x21   :  { %943 = shalt.err (!%p940_p1)
}
  0x22   :  { %31 = dma.hbm_to_vmem [thread:$0]  %s1043_s1, 256, %s29_s24, [#allocation6]  }
  0x23   :  { %966 = dma.done.wait [#allocation3], 32768  }
  0x24   :  { %967 = vsyncadd [#allocation3], 4294934528 }
  0x25   :  { %968 = dma.done.wait [#allocation6], 256  }
  0x26   :  { %969 = vsyncadd [#allocation6], 4294967040  ;;  %v41_v0 = vld [vmem:[#allocation2 + $0x8] sm:$0xff]  ;;  %v43_v2 = vld [vmem:[#allocation2 + $0x18] sm:$0xff]  ;;  %s976_s1 = smov [#allocation7]  }
  0x27   :  { %v49_v1 = vld [vmem:[#allocation2 + $0x48] sm:$0xff]  ;;  %v51_v4 = vld [vmem:[#allocation2 + $0x58] sm:$0xff]  ;;  %v40_v5 = vld [vmem:[#allocation2] sm:$0xff]  ;;  %s624_s6 = sshll.u32 %s976_s1, 4  ;;  %s625_s6 = int_to_ptr.vmem [resolvable:$true] %s624_s6 }
  0x28   :  { %v637_v3 = vpack.c.bf16 %v49_v1, %v41_v0  ;;  %v48_v6 = vld [vmem:[#allocation2 + $0x40] sm:$0xff]  ;;  %v701_v7 = vpack.c.bf16 %v51_v4, %v43_v2  ;;  %v42_v9 = vld [vmem:[#allocation2 + $0x10] sm:$0xff]  ;;  %v57_v11 = vld [vmem:[#allocation2 + $0x88] sm:$0xff]  ;;  %s944_s7 = scalar_lea.vmem %s625_s6, 1024  ;;  %p949_p3 = scmp.lt.s32.totalorder %s625_s6, %s625_s6 }
  0x29   :  { %v639_v8 = vpack.c.bf16 %v48_v6, %v40_v5  ;;  %v50_v10 = vld [vmem:[#allocation2 + $0x50] sm:$0xff]  ;;  %v65_v13 = vld [vmem:[#allocation2 + $0xc8] sm:$0xff]  ;;  %v59_v14 = vld [vmem:[#allocation2 + $0x98] sm:$0xff]  ;;  %p945_p2 = scmp.ne.s32.totalorder %s625_s6, %s944_s7  ;;  %p950_p4 = scmp.lt.s32.totalorder %s944_s7, %s944_s7 }
  0x2a   :  { %638 = vmatprep.subr.bf16.mxu0 %v637_v3  ;;  %v703_v12 = vpack.c.bf16 %v50_v10, %v42_v9  ;;  %v67_v15 = vld [vmem:[#allocation2 + $0xd8] sm:$0xff]  ;;  %702 = vmatprep.subr.bf16.mxu1 %v701_v7  ;;  %v641_v16 = vpack.c.bf16 %v65_v13, %v57_v11  ;;  %v56_v18 = vld [vmem:[#allocation2 + $0x80] sm:$0xff]  ;;  %v58_v20 = vld [vmem:[#allocation2 + $0x90] sm:$0xff] }
  0x2b   :  { %640 = vmatpush1.bf16.msra.mxu0 %v639_v8  ;;  %v705_v17 = vpack.c.bf16 %v67_v15, %v59_v14  ;;  %v64_v19 = vld [vmem:[#allocation2 + $0xc0] sm:$0xff]  ;;  %v66_v22 = vld [vmem:[#allocation2 + $0xd0] sm:$0xff]  ;;  %v73_v23 = vld [vmem:[#allocation2 + $0x108] sm:$0xff]  ;;  %p951_p5 = por %p950_p4, %p949_p3 }
  0x2c   :  { %704 = vmatpush1.bf16.msra.mxu1 %v703_v12  ;;  %v643_v21 = vpack.c.bf16 %v64_v19, %v56_v18  ;;  %v81_v24 = vld [vmem:[#allocation2 + $0x148] sm:$0xff]  ;;  %642 = vmatprep.subr.bf16.mxu0 %v641_v16  ;;  %v707_v25 = vpack.c.bf16 %v66_v22, %v58_v20  ;;  %v75_v27 = vld [vmem:[#allocation2 + $0x118] sm:$0xff]  ;;  %v72_v29 = vld [vmem:[#allocation2 + $0x100] sm:$0xff] }
  0x2d   :  { %706 = vmatprep.subr.bf16.mxu1 %v705_v17  ;;  %v645_v26 = vpack.c.bf16 %v81_v24, %v73_v23  ;;  %v83_v28 = vld [vmem:[#allocation2 + $0x158] sm:$0xff]  ;;  %v80_v31 = vld [vmem:[#allocation2 + $0x140] sm:$0xff]  ;;  %v74_v32 = vld [vmem:[#allocation2 + $0x110] sm:$0xff]  ;;  %p952_p6 = pnand %p951_p5, %p945_p2 }
  0x2e   :  { %v709_v30 = vpack.c.bf16 %v83_v28, %v75_v27  ;;  %v82_v33 = vld [vmem:[#allocation2 + $0x150] sm:$0xff]  ;;  %v647_v34 = vpack.c.bf16 %v80_v31, %v72_v29  ;;  %v89_v35 = vld [vmem:[#allocation2 + $0x188] sm:$0xff]  ;;  %v91_v37 = vld [vmem:[#allocation2 + $0x198] sm:$0xff] }
  0x2f   :  { %644 = vmatpush1.bf16.msra.mxu0 %v643_v21  ;;  %v97_v36 = vld [vmem:[#allocation2 + $0x1c8] sm:$0xff]  ;;  %v711_v38 = vpack.c.bf16 %v82_v33, %v74_v32  ;;  %v99_v40 = vld [vmem:[#allocation2 + $0x1d8] sm:$0xff]  ;;  %v88_v41 = vld [vmem:[#allocation2 + $0x180] sm:$0xff] }
  0x30   :  { %708 = vmatpush1.bf16.msra.mxu1 %v707_v25  ;;  %646 = vmatprep.subr.bf16.mxu0 %v645_v26  ;;  %v649_v39 = vpack.c.bf16 %v97_v36, %v89_v35  ;;  %v96_v42 = vld [vmem:[#allocation2 + $0x1c0] sm:$0xff]  ;;  %v713_v43 = vpack.c.bf16 %v99_v40, %v91_v37  ;;  %v90_v44 = vld [vmem:[#allocation2 + $0x190] sm:$0xff]  ;;  %v105_v46 = vld [vmem:[#allocation2 + $0x208] sm:$0xff] }
  0x31   :  { %710 = vmatprep.subr.bf16.mxu1 %v709_v30  ;;  %v98_v45 = vld [vmem:[#allocation2 + $0x1d0] sm:$0xff]  ;;  %v113_v47 = vld [vmem:[#allocation2 + $0x248] sm:$0xff]  ;;  %v107_v48 = vld [vmem:[#allocation2 + $0x218] sm:$0xff]  ;;  %v651_v50 = vpack.c.bf16 %v96_v42, %v88_v41 }
  0x32   :  { %v115_v49 = vld [vmem:[#allocation2 + $0x258] sm:$0xff]  ;;  %v715_v51 = vpack.c.bf16 %v98_v45, %v90_v44  ;;  %v653_v52 = vpack.c.bf16 %v113_v47, %v105_v46  ;;  %v104_v53 = vld [vmem:[#allocation2 + $0x200] sm:$0xff]  ;;  %v106_v55 = vld [vmem:[#allocation2 + $0x210] sm:$0xff] }
  0x33   :  { %648 = vmatpush1.bf16.msra.mxu0 %v647_v34  ;;  %v112_v54 = vld [vmem:[#allocation2 + $0x240] sm:$0xff]  ;;  %v717_v56 = vpack.c.bf16 %v115_v49, %v107_v48  ;;  %v114_v57 = vld [vmem:[#allocation2 + $0x250] sm:$0xff]  ;;  %v121_v58 = vld [vmem:[#allocation2 + $0x288] sm:$0xff] }
  0x34   :  { %712 = vmatpush1.bf16.msra.mxu1 %v711_v38  ;;  %650 = vmatprep.subr.bf16.mxu0 %v649_v39  ;;  %v129_v59 = vld [vmem:[#allocation2 + $0x2c8] sm:$0xff]  ;;  %v123_v60 = vld [vmem:[#allocation2 + $0x298] sm:$0xff]  ;;  %v655_v62 = vpack.c.bf16 %v112_v54, %v104_v53  ;;  %v719_v63 = vpack.c.bf16 %v114_v57, %v106_v55  ;;  %v120_v1 = vld [vmem:[#allocation2 + $0x280] sm:$0xff] }
  0x35   :  { %714 = vmatprep.subr.bf16.mxu1 %v713_v43  ;;  %v131_v61 = vld [vmem:[#allocation2 + $0x2d8] sm:$0xff]  ;;  %v657_v0 = vpack.c.bf16 %v129_v59, %v121_v58  ;;  %v128_v2 = vld [vmem:[#allocation2 + $0x2c0] sm:$0xff]  ;;  %v122_v3 = vld [vmem:[#allocation2 + $0x290] sm:$0xff] }
  0x36   :  { %v721_v4 = vpack.c.bf16 %v131_v61, %v123_v60  ;;  %v130_v5 = vld [vmem:[#allocation2 + $0x2d0] sm:$0xff]  ;;  %v137_v6 = vld [vmem:[#allocation2 + $0x308] sm:$0xff]  ;;  %v139_v8 = vld [vmem:[#allocation2 + $0x318] sm:$0xff]  ;;  %v659_v10 = vpack.c.bf16 %v128_v2, %v120_v1 }
  0x37   :  { %652 = vmatpush1.bf16.msra.mxu0 %v651_v50  ;;  %v145_v7 = vld [vmem:[#allocation2 + $0x348] sm:$0xff]  ;;  %v147_v9 = vld [vmem:[#allocation2 + $0x358] sm:$0xff]  ;;  %v723_v11 = vpack.c.bf16 %v130_v5, %v122_v3  ;;  %v136_v13 = vld [vmem:[#allocation2 + $0x300] sm:$0xff] }
  0x38   :  { %716 = vmatpush1.bf16.msra.mxu1 %v715_v51  ;;  %654 = vmatprep.subr.bf16.mxu0 %v653_v52  ;;  %v661_v12 = vpack.c.bf16 %v145_v7, %v137_v6  ;;  %v144_v14 = vld [vmem:[#allocation2 + $0x340] sm:$0xff]  ;;  %v138_v15 = vld [vmem:[#allocation2 + $0x310] sm:$0xff]  ;;  %v725_v16 = vpack.c.bf16 %v147_v9, %v139_v8  ;;  %v153_v18 = vld [vmem:[#allocation2 + $0x388] sm:$0xff] }
  0x39   :  { %718 = vmatprep.subr.bf16.mxu1 %v717_v56  ;;  %v146_v17 = vld [vmem:[#allocation2 + $0x350] sm:$0xff]  ;;  %v161_v19 = vld [vmem:[#allocation2 + $0x3c8] sm:$0xff]  ;;  %v155_v20 = vld [vmem:[#allocation2 + $0x398] sm:$0xff]  ;;  %v663_v22 = vpack.c.bf16 %v144_v14, %v136_v13 }
  0x3a   :  { %v163_v21 = vld [vmem:[#allocation2 + $0x3d8] sm:$0xff]  ;;  %v727_v23 = vpack.c.bf16 %v146_v17, %v138_v15  ;;  %v665_v24 = vpack.c.bf16 %v161_v19, %v153_v18  ;;  %v152_v25 = vld [vmem:[#allocation2 + $0x380] sm:$0xff]  ;;  %v154_v27 = vld [vmem:[#allocation2 + $0x390] sm:$0xff] }
  0x3b   :  { %656 = vmatpush1.bf16.msra.mxu0 %v655_v62  ;;  %v160_v26 = vld [vmem:[#allocation2 + $0x3c0] sm:$0xff]  ;;  %v729_v28 = vpack.c.bf16 %v163_v21, %v155_v20  ;;  %v162_v29 = vld [vmem:[#allocation2 + $0x3d0] sm:$0xff]  ;;  %v169_v30 = vld [vmem:[#allocation2 + $0x408] sm:$0xff] }
  0x3c   :  { %720 = vmatpush1.bf16.msra.mxu1 %v719_v63  ;;  %658 = vmatprep.subr.bf16.mxu0 %v657_v0  ;;  %v177_v31 = vld [vmem:[#allocation2 + $0x448] sm:$0xff]  ;;  %v171_v32 = vld [vmem:[#allocation2 + $0x418] sm:$0xff]  ;;  %v667_v34 = vpack.c.bf16 %v160_v26, %v152_v25  ;;  %v731_v35 = vpack.c.bf16 %v162_v29, %v154_v27  ;;  %v168_v37 = vld [vmem:[#allocation2 + $0x400] sm:$0xff] }
  0x3d   :  { %722 = vmatprep.subr.bf16.mxu1 %v721_v4  ;;  %v179_v33 = vld [vmem:[#allocation2 + $0x458] sm:$0xff]  ;;  %v669_v36 = vpack.c.bf16 %v177_v31, %v169_v30  ;;  %v176_v38 = vld [vmem:[#allocation2 + $0x440] sm:$0xff]  ;;  %v170_v39 = vld [vmem:[#allocation2 + $0x410] sm:$0xff] }
  0x3e   :  { %v733_v40 = vpack.c.bf16 %v179_v33, %v171_v32  ;;  %v178_v41 = vld [vmem:[#allocation2 + $0x450] sm:$0xff]  ;;  %v185_v42 = vld [vmem:[#allocation2 + $0x488] sm:$0xff]  ;;  %v187_v44 = vld [vmem:[#allocation2 + $0x498] sm:$0xff]  ;;  %v671_v46 = vpack.c.bf16 %v176_v38, %v168_v37 }
  0x3f   :  { %660 = vmatpush1.bf16.msra.mxu0 %v659_v10  ;;  %v193_v43 = vld [vmem:[#allocation2 + $0x4c8] sm:$0xff]  ;;  %v195_v45 = vld [vmem:[#allocation2 + $0x4d8] sm:$0xff]  ;;  %v735_v47 = vpack.c.bf16 %v178_v41, %v170_v39  ;;  %v184_v49 = vld [vmem:[#allocation2 + $0x480] sm:$0xff] }
  0x40   :  { %724 = vmatpush1.bf16.msra.mxu1 %v723_v11  ;;  %662 = vmatprep.subr.bf16.mxu0 %v661_v12  ;;  %v673_v48 = vpack.c.bf16 %v193_v43, %v185_v42  ;;  %v192_v50 = vld [vmem:[#allocation2 + $0x4c0] sm:$0xff]  ;;  %v186_v51 = vld [vmem:[#allocation2 + $0x490] sm:$0xff]  ;;  %v737_v52 = vpack.c.bf16 %v195_v45, %v187_v44  ;;  %v201_v54 = vld [vmem:[#allocation2 + $0x508] sm:$0xff] }
  0x41   :  { %726 = vmatprep.subr.bf16.mxu1 %v725_v16  ;;  %v194_v53 = vld [vmem:[#allocation2 + $0x4d0] sm:$0xff]  ;;  %v209_v55 = vld [vmem:[#allocation2 + $0x548] sm:$0xff]  ;;  %v203_v56 = vld [vmem:[#allocation2 + $0x518] sm:$0xff]  ;;  %v675_v58 = vpack.c.bf16 %v192_v50, %v184_v49 }
  0x42   :  { %v211_v57 = vld [vmem:[#allocation2 + $0x558] sm:$0xff]  ;;  %v739_v59 = vpack.c.bf16 %v194_v53, %v186_v51  ;;  %v677_v60 = vpack.c.bf16 %v209_v55, %v201_v54  ;;  %v200_v61 = vld [vmem:[#allocation2 + $0x500] sm:$0xff]  ;;  %v202_v63 = vld [vmem:[#allocation2 + $0x510] sm:$0xff] }
  0x43   :  { %664 = vmatpush1.bf16.msra.mxu0 %v663_v22  ;;  %v208_v62 = vld [vmem:[#allocation2 + $0x540] sm:$0xff]  ;;  %v741_v0 = vpack.c.bf16 %v211_v57, %v203_v56  ;;  %v210_v1 = vld [vmem:[#allocation2 + $0x550] sm:$0xff]  ;;  %v217_v2 = vld [vmem:[#allocation2 + $0x588] sm:$0xff] }
  0x44   :  { %728 = vmatpush1.bf16.msra.mxu1 %v727_v23  ;;  %666 = vmatprep.subr.bf16.mxu0 %v665_v24  ;;  %v225_v3 = vld [vmem:[#allocation2 + $0x5c8] sm:$0xff]  ;;  %v219_v4 = vld [vmem:[#allocation2 + $0x598] sm:$0xff]  ;;  %v679_v6 = vpack.c.bf16 %v208_v62, %v200_v61  ;;  %v216_v7 = vld [vmem:[#allocation2 + $0x580] sm:$0xff]  ;;  %v743_v8 = vpack.c.bf16 %v210_v1, %v202_v63 }
  0x45   :  { %730 = vmatprep.subr.bf16.mxu1 %v729_v28  ;;  %v227_v5 = vld [vmem:[#allocation2 + $0x5d8] sm:$0xff]  ;;  %v681_v9 = vpack.c.bf16 %v225_v3, %v217_v2  ;;  %v224_v10 = vld [vmem:[#allocation2 + $0x5c0] sm:$0xff]  ;;  %v218_v11 = vld [vmem:[#allocation2 + $0x590] sm:$0xff] }
  0x46   :  { %v226_v12 = vld [vmem:[#allocation2 + $0x5d0] sm:$0xff]  ;;  %v745_v13 = vpack.c.bf16 %v227_v5, %v219_v4  ;;  %v233_v14 = vld [vmem:[#allocation2 + $0x608] sm:$0xff]  ;;  %v235_v17 = vld [vmem:[#allocation2 + $0x618] sm:$0xff]  ;;  %v683_v19 = vpack.c.bf16 %v224_v10, %v216_v7 }
  0x47   :  { %668 = vmatpush1.bf16.msra.mxu0 %v667_v34  ;;  %v241_v15 = vld [vmem:[#allocation2 + $0x648] sm:$0xff]  ;;  %v243_v18 = vld [vmem:[#allocation2 + $0x658] sm:$0xff]  ;;  %v747_v20 = vpack.c.bf16 %v226_v12, %v218_v11  ;;  %v232_v22 = vld [vmem:[#allocation2 + $0x600] sm:$0xff] }
  0x48   :  { %732 = vmatpush1.bf16.msra.mxu1 %v731_v35  ;;  %670 = vmatprep.subr.bf16.mxu0 %v669_v36  ;;  %v1018_v16 = vld [vmem:[#allocation5 + $0x8] sm:$0xff]  ;;  %v685_v21 = vpack.c.bf16 %v241_v15, %v233_v14  ;;  %v240_v23 = vld [vmem:[#allocation2 + $0x640] sm:$0xff]  ;;  %v234_v24 = vld [vmem:[#allocation2 + $0x610] sm:$0xff]  ;;  %v749_v25 = vpack.c.bf16 %v243_v18, %v235_v17 }
  0x49   :  { %734 = vmatprep.subr.bf16.mxu1 %v733_v40  ;;  %360 = vmatprep.mubr.f32.mxu0 %v1018_v16  ;;  %v242_v26 = vld [vmem:[#allocation2 + $0x650] sm:$0xff]  ;;  %v249_v27 = vld [vmem:[#allocation2 + $0x688] sm:$0xff]  ;;  %v251_v29 = vld [vmem:[#allocation2 + $0x698] sm:$0xff]  ;;  %v687_v31 = vpack.c.bf16 %v240_v23, %v232_v22 }
  0x4a   :  { %431 = vmatprep.mubr.f32.mxu1 %v1018_v16  ;;  %v257_v28 = vld [vmem:[#allocation2 + $0x6c8] sm:$0xff]  ;;  %v259_v30 = vld [vmem:[#allocation2 + $0x6d8] sm:$0xff]  ;;  %v751_v32 = vpack.c.bf16 %v242_v26, %v234_v24  ;;  %v248_v34 = vld [vmem:[#allocation2 + $0x680] sm:$0xff] }
  0x4b   :  { %672 = vmatpush1.bf16.msra.mxu0 %v671_v46  ;;  %v689_v33 = vpack.c.bf16 %v257_v28, %v249_v27  ;;  %v256_v35 = vld [vmem:[#allocation2 + $0x6c0] sm:$0xff]  ;;  %v250_v36 = vld [vmem:[#allocation2 + $0x690] sm:$0xff]  ;;  %v753_v37 = vpack.c.bf16 %v259_v30, %v251_v29  ;;  %v265_v39 = vld [vmem:[#allocation2 + $0x708] sm:$0xff] }
  0x4c   :  { %736 = vmatpush1.bf16.msra.mxu1 %v735_v47  ;;  %674 = vmatprep.subr.bf16.mxu0 %v673_v48  ;;  %v258_v38 = vld [vmem:[#allocation2 + $0x6d0] sm:$0xff]  ;;  %v273_v40 = vld [vmem:[#allocation2 + $0x748] sm:$0xff]  ;;  %v267_v41 = vld [vmem:[#allocation2 + $0x718] sm:$0xff]  ;;  %v691_v43 = vpack.c.bf16 %v256_v35, %v248_v34 }
  0x4d   :  { %738 = vmatprep.subr.bf16.mxu1 %v737_v52  ;;  %v275_v42 = vld [vmem:[#allocation2 + $0x758] sm:$0xff]  ;;  %v755_v44 = vpack.c.bf16 %v258_v38, %v250_v36  ;;  %v693_v45 = vpack.c.bf16 %v273_v40, %v265_v39  ;;  %v264_v46 = vld [vmem:[#allocation2 + $0x700] sm:$0xff]  ;;  %v266_v48 = vld [vmem:[#allocation2 + $0x710] sm:$0xff] }
  0x4e   :  { %v272_v47 = vld [vmem:[#allocation2 + $0x740] sm:$0xff]  ;;  %v757_v49 = vpack.c.bf16 %v275_v42, %v267_v41  ;;  %v274_v50 = vld [vmem:[#allocation2 + $0x750] sm:$0xff]  ;;  %v281_v51 = vld [vmem:[#allocation2 + $0x788] sm:$0xff] }
  0x4f   :  { %676 = vmatpush1.bf16.msra.mxu0 %v675_v58  ;;  %v289_v52 = vld [vmem:[#allocation2 + $0x7c8] sm:$0xff]  ;;  %v283_v53 = vld [vmem:[#allocation2 + $0x798] sm:$0xff]  ;;  %v695_v55 = vpack.c.bf16 %v272_v47, %v264_v46  ;;  %v759_v56 = vpack.c.bf16 %v274_v50, %v266_v48  ;;  %v280_v58 = vld [vmem:[#allocation2 + $0x780] sm:$0xff] }
  0x50   :  { %740 = vmatpush1.bf16.msra.mxu1 %v739_v59  ;;  %678 = vmatprep.subr.bf16.mxu0 %v677_v60  ;;  %v291_v54 = vld [vmem:[#allocation2 + $0x7d8] sm:$0xff]  ;;  %v697_v57 = vpack.c.bf16 %v289_v52, %v281_v51  ;;  %v288_v59 = vld [vmem:[#allocation2 + $0x7c0] sm:$0xff]  ;;  %v282_v60 = vld [vmem:[#allocation2 + $0x790] sm:$0xff] }
  0x51   :  { %742 = vmatprep.subr.bf16.mxu1 %v741_v0  ;;  %v761_v61 = vpack.c.bf16 %v291_v54, %v283_v53  ;;  %v290_v62 = vld [vmem:[#allocation2 + $0x7d0] sm:$0xff]  ;;  %v45_v63 = vld [vmem:[#allocation2 + $0x28] sm:$0xff]  ;;  %v47_v1 = vld [vmem:[#allocation2 + $0x38] sm:$0xff]  ;;  %v699_v3 = vpack.c.bf16 %v288_v59, %v280_v58 }
  0x52   :  { %v53_v0 = vld [vmem:[#allocation2 + $0x68] sm:$0xff]  ;;  %v55_v2 = vld [vmem:[#allocation2 + $0x78] sm:$0xff]  ;;  %v763_v4 = vpack.c.bf16 %v290_v62, %v282_v60  ;;  %v52_v7 = vld [vmem:[#allocation2 + $0x60] sm:$0xff] }
  0x53   :  { %680 = vmatpush1.bf16.msra.mxu0 %v679_v6  ;;  %v765_v5 = vpack.c.bf16 %v53_v0, %v45_v63  ;;  %v44_v6 = vld [vmem:[#allocation2 + $0x20] sm:$0xff]  ;;  %v54_v10 = vld [vmem:[#allocation2 + $0x70] sm:$0xff]  ;;  %v61_v11 = vld [vmem:[#allocation2 + $0xa8] sm:$0xff] }
  0x54   :  { %744 = vmatpush1.bf16.msra.mxu1 %v743_v8  ;;  %682 = vmatprep.subr.bf16.mxu0 %v681_v9  ;;  %v46_v8 = vld [vmem:[#allocation2 + $0x30] sm:$0xff]  ;;  %v829_v9 = vpack.c.bf16 %v55_v2, %v47_v1  ;;  %v69_v12 = vld [vmem:[#allocation2 + $0xe8] sm:$0xff]  ;;  %v71_v14 = vld [vmem:[#allocation2 + $0xf8] sm:$0xff]  ;;  %v767_v17 = vpack.c.bf16 %v52_v7, %v44_v6 }
  0x55   :  { %746 = vmatprep.subr.bf16.mxu1 %v745_v13  ;;  %v63_v13 = vld [vmem:[#allocation2 + $0xb8] sm:$0xff]  ;;  %v1022_v15 = vld [vmem:[#allocation5] sm:$0xff]  ;;  %v831_v18 = vpack.c.bf16 %v54_v10, %v46_v8  ;;  %v62_v22 = vld [vmem:[#allocation2 + $0xb0] sm:$0xff] }
  0x56   :  { %v833_v23 = vpack.c.bf16 %v71_v14, %v63_v13  ;;  %v70_v24 = vld [vmem:[#allocation2 + $0xf0] sm:$0xff]  ;;  %v85_v26 = vld [vmem:[#allocation2 + $0x168] sm:$0xff]  ;;  %v79_v27 = vld [vmem:[#allocation2 + $0x138] sm:$0xff] }
  0x57   :  { %684 = vmatpush1.bf16.msra.mxu0 %v683_v19  ;;  %v769_v19 = vpack.c.bf16 %v69_v12, %v61_v11  ;;  %v87_v28 = vld [vmem:[#allocation2 + $0x178] sm:$0xff]  ;;  %v835_v30 = vpack.c.bf16 %v70_v24, %v62_v22  ;;  %v78_v34 = vld [vmem:[#allocation2 + $0x130] sm:$0xff]  ;;  %v101_v38 = vld [vmem:[#allocation2 + $0x1e8] sm:$0xff] }
  0x58   :  { %748 = vmatpush1.bf16.msra.mxu1 %v747_v20  ;;  %686 = vmatprep.subr.bf16.mxu0 %v685_v21  ;;  %v60_v20 = vld [vmem:[#allocation2 + $0xa0] sm:$0xff]  ;;  %v837_v35 = vpack.c.bf16 %v87_v28, %v79_v27  ;;  %v86_v36 = vld [vmem:[#allocation2 + $0x170] sm:$0xff]  ;;  %v95_v39 = vld [vmem:[#allocation2 + $0x1b8] sm:$0xff] }
  0x59   :  { %750 = vmatprep.subr.bf16.mxu1 %v749_v25  ;;  %v68_v21 = vld [vmem:[#allocation2 + $0xe0] sm:$0xff]  ;;  %v77_v25 = vld [vmem:[#allocation2 + $0x128] sm:$0xff]  ;;  %v103_v40 = vld [vmem:[#allocation2 + $0x1f8] sm:$0xff]  ;;  %v839_v42 = vpack.c.bf16 %v86_v36, %v78_v34 }
  0x5a   :  { %v771_v29 = vpack.c.bf16 %v68_v21, %v60_v20  ;;  %v94_v46 = vld [vmem:[#allocation2 + $0x1b0] sm:$0xff]  ;;  %v841_v47 = vpack.c.bf16 %v103_v40, %v95_v39  ;;  %v117_v50 = vld [vmem:[#allocation2 + $0x268] sm:$0xff]  ;;  %v111_v51 = vld [vmem:[#allocation2 + $0x238] sm:$0xff] }
  0x5b   :  { %688 = vmatpush1.bf16.msra.mxu0 %v687_v31  ;;  %v773_v31 = vpack.c.bf16 %v85_v26, %v77_v25  ;;  %v102_v48 = vld [vmem:[#allocation2 + $0x1f0] sm:$0xff]  ;;  %v119_v52 = vld [vmem:[#allocation2 + $0x278] sm:$0xff]  ;;  %v125_v60 = vld [vmem:[#allocation2 + $0x2a8] sm:$0xff] }
  0x5c   :  { %752 = vmatpush1.bf16.msra.mxu1 %v751_v32  ;;  %690 = vmatprep.subr.bf16.mxu0 %v689_v33  ;;  %v76_v32 = vld [vmem:[#allocation2 + $0x120] sm:$0xff]  ;;  %v845_v58 = vpack.c.bf16 %v119_v52, %v111_v51  ;;  %v118_v59 = vld [vmem:[#allocation2 + $0x270] sm:$0xff]  ;;  %v127_v62 = vld [vmem:[#allocation2 + $0x2b8] sm:$0xff] }
  0x5d   :  { %754 = vmatprep.subr.bf16.mxu1 %v753_v37  ;;  %v84_v33 = vld [vmem:[#allocation2 + $0x160] sm:$0xff]  ;;  %v93_v37 = vld [vmem:[#allocation2 + $0x1a8] sm:$0xff]  ;;  %v135_v63 = vld [vmem:[#allocation2 + $0x2f8] sm:$0xff] }
  0x5e   :  { %v775_v41 = vpack.c.bf16 %v84_v33, %v76_v32  ;;  %v849_v6 = vpack.c.bf16 %v135_v63, %v127_v62  ;;  %v134_v7 = vld [vmem:[#allocation2 + $0x2f0] sm:$0xff]  ;;  %v141_v8 = vld [vmem:[#allocation2 + $0x328] sm:$0xff]  ;;  %v143_v10 = vld [vmem:[#allocation2 + $0x338] sm:$0xff] }
  0x5f   :  { %692 = vmatpush1.bf16.msra.mxu0 %v691_v43  ;;  %v777_v43 = vpack.c.bf16 %v101_v38, %v93_v37  ;;  %v151_v11 = vld [vmem:[#allocation2 + $0x378] sm:$0xff]  ;;  %v150_v21 = vld [vmem:[#allocation2 + $0x370] sm:$0xff]  ;;  %v157_v22 = vld [vmem:[#allocation2 + $0x3a8] sm:$0xff] }
  0x60   :  { %756 = vmatpush1.bf16.msra.mxu1 %v755_v44  ;;  %694 = vmatprep.subr.bf16.mxu0 %v693_v45  ;;  %v92_v44 = vld [vmem:[#allocation2 + $0x1a0] sm:$0xff]  ;;  %v853_v20 = vpack.c.bf16 %v151_v11, %v143_v10  ;;  %v159_v24 = vld [vmem:[#allocation2 + $0x3b8] sm:$0xff]  ;;  %v166_v33 = vld [vmem:[#allocation2 + $0x3f0] sm:$0xff] }
  0x61   :  { %758 = vmatprep.subr.bf16.mxu1 %v757_v49  ;;  %v100_v45 = vld [vmem:[#allocation2 + $0x1e0] sm:$0xff]  ;;  %v109_v49 = vld [vmem:[#allocation2 + $0x228] sm:$0xff]  ;;  %v167_v25 = vld [vmem:[#allocation2 + $0x3f8] sm:$0xff] }
  0x62   :  { %v779_v53 = vpack.c.bf16 %v100_v45, %v92_v44  ;;  %v781_v54 = vpack.c.bf16 %v117_v50, %v109_v49  ;;  %v857_v32 = vpack.c.bf16 %v167_v25, %v159_v24  ;;  %v173_v34 = vld [vmem:[#allocation2 + $0x428] sm:$0xff]  ;;  %v175_v36 = vld [vmem:[#allocation2 + $0x438] sm:$0xff]  ;;  %v182_v45 = vld [vmem:[#allocation2 + $0x470] sm:$0xff] }
  0x63   :  { %696 = vmatpush1.bf16.msra.mxu0 %v695_v55  ;;  %v108_v55 = vld [vmem:[#allocation2 + $0x220] sm:$0xff]  ;;  %v183_v37 = vld [vmem:[#allocation2 + $0x478] sm:$0xff] }
  0x64   :  { %760 = vmatpush1.bf16.msra.mxu1 %v759_v56  ;;  %698 = vmatprep.subr.bf16.mxu0 %v697_v57  ;;  %v116_v56 = vld [vmem:[#allocation2 + $0x260] sm:$0xff]  ;;  %v110_v57 = vld [vmem:[#allocation2 + $0x230] sm:$0xff]  ;;  %v861_v44 = vpack.c.bf16 %v183_v37, %v175_v36  ;;  %v199_v49 = vld [vmem:[#allocation2 + $0x4f8] sm:$0xff] }
  0x65   :  { %762 = vmatprep.subr.bf16.mxu1 %v761_v61  ;;  %v133_v61 = vld [vmem:[#allocation2 + $0x2e8] sm:$0xff]  ;;  %v783_v0 = vpack.c.bf16 %v116_v56, %v108_v55  ;;  %v847_v1 = vpack.c.bf16 %v118_v59, %v110_v57  ;;  %v198_v56 = vld [vmem:[#allocation2 + $0x4f0] sm:$0xff]  ;;  %v207_v59 = vld [vmem:[#allocation2 + $0x538] sm:$0xff] }
  0x66   :  { %v785_v2 = vpack.c.bf16 %v133_v61, %v125_v60  ;;  %v205_v57 = vld [vmem:[#allocation2 + $0x528] sm:$0xff]  ;;  %v215_v60 = vld [vmem:[#allocation2 + $0x578] sm:$0xff] }
  0x67   :  { %700 = vmatpush1.bf16.msra.mxu0 %v699_v3  ;;  %v124_v3 = vld [vmem:[#allocation2 + $0x2a0] sm:$0xff] }
  0x68   :  { %764 = vmatpush1.bf16.msra.mxu1 %v763_v4  ;;  %766 = vmatprep.subr.bf16.mxu0 %v765_v5  ;;  %v132_v4 = vld [vmem:[#allocation2 + $0x2e0] sm:$0xff]  ;;  %v126_v5 = vld [vmem:[#allocation2 + $0x2b0] sm:$0xff] }
  0x69   :  { %830 = vmatprep.subr.bf16.mxu1 %v829_v9  ;;  %v149_v9 = vld [vmem:[#allocation2 + $0x368] sm:$0xff]  ;;  %v787_v12 = vpack.c.bf16 %v132_v4, %v124_v3  ;;  %v851_v13 = vpack.c.bf16 %v134_v7, %v126_v5  ;;  %v869_v3 = vpack.c.bf16 %v215_v60, %v207_v59  ;;  %v214_v4 = vld [vmem:[#allocation2 + $0x570] sm:$0xff]  ;;  %v223_v7 = vld [vmem:[#allocation2 + $0x5b8] sm:$0xff] }
  0x6a   :  { %361 = vmatmul.mubr.f32.vlgmr.msra.gmra.mrb[0].mxu0 %v1022_v15  ;;  %v789_v14 = vpack.c.bf16 %v149_v9, %v141_v8  ;;  %v221_v5 = vld [vmem:[#allocation2 + $0x5a8] sm:$0xff]  ;;  %v231_v8 = vld [vmem:[#allocation2 + $0x5f8] sm:$0xff] }
  0x6b   :  { %432 = vmatmul.mubr.f32.vlgmr.msra.gmra.mrb[0].mxu1 %v1022_v15  ;;  %768 = vmatpush1.bf16.msra.mxu0 %v767_v17  ;;  %v140_v17 = vld [vmem:[#allocation2 + $0x320] sm:$0xff] }
  0x6c   :  { %832 = vmatpush1.bf16.msra.mxu1 %v831_v18  ;;  %770 = vmatprep.subr.bf16.mxu0 %v769_v19  ;;  %v148_v18 = vld [vmem:[#allocation2 + $0x360] sm:$0xff]  ;;  %v142_v19 = vld [vmem:[#allocation2 + $0x330] sm:$0xff] }
  0x6d   :  { %834 = vmatprep.subr.bf16.mxu1 %v833_v23  ;;  %502 = vmatprep.mubr.f32.mxu0 %v1018_v16  ;;  %v165_v23 = vld [vmem:[#allocation2 + $0x3e8] sm:$0xff]  ;;  %v791_v26 = vpack.c.bf16 %v148_v18, %v140_v17  ;;  %v855_v27 = vpack.c.bf16 %v150_v21, %v142_v19  ;;  %v873_v17 = vpack.c.bf16 %v231_v8, %v223_v7  ;;  %v230_v18 = vld [vmem:[#allocation2 + $0x5f0] sm:$0xff]  ;;  %v239_v21 = vld [vmem:[#allocation2 + $0x638] sm:$0xff] }
  0x6e   :  { %573 = vmatprep.mubr.f32.mxu1 %v1018_v16  ;;  %v843_v16 = vpack.c.bf16 %v102_v48, %v94_v46  ;;  %v793_v28 = vpack.c.bf16 %v165_v23, %v157_v22  ;;  %v189_v46 = vld [vmem:[#allocation2 + $0x4a8] sm:$0xff]  ;;  %v191_v48 = vld [vmem:[#allocation2 + $0x4b8] sm:$0xff] }
  0x6f   :  { %772 = vmatpush1.bf16.msra.mxu0 %v771_v29  ;;  %v156_v29 = vld [vmem:[#allocation2 + $0x3a0] sm:$0xff]  ;;  %v865_v55 = vpack.c.bf16 %v199_v49, %v191_v48  ;;  %v237_v19 = vld [vmem:[#allocation2 + $0x628] sm:$0xff]  ;;  %v247_v22 = vld [vmem:[#allocation2 + $0x678] sm:$0xff] }
  0x70   :  { %836 = vmatpush1.bf16.msra.mxu1 %v835_v30  ;;  %774 = vmatprep.subr.bf16.mxu0 %v773_v31  ;;  %v164_v30 = vld [vmem:[#allocation2 + $0x3e0] sm:$0xff]  ;;  %v158_v31 = vld [vmem:[#allocation2 + $0x3b0] sm:$0xff] }
  0x71   :  { %838 = vmatprep.subr.bf16.mxu1 %v837_v35  ;;  %v181_v35 = vld [vmem:[#allocation2 + $0x468] sm:$0xff]  ;;  %v795_v38 = vpack.c.bf16 %v164_v30, %v156_v29  ;;  %v859_v39 = vpack.c.bf16 %v166_v33, %v158_v31  ;;  %v877_v29 = vpack.c.bf16 %v247_v22, %v239_v21  ;;  %v246_v30 = vld [vmem:[#allocation2 + $0x670] sm:$0xff]  ;;  %v255_v33 = vld [vmem:[#allocation2 + $0x6b8] sm:$0xff] }
  0x72   :  { %v797_v40 = vpack.c.bf16 %v181_v35, %v173_v34  ;;  %v253_v31 = vld [vmem:[#allocation2 + $0x6a8] sm:$0xff]  ;;  %v263_v34 = vld [vmem:[#allocation2 + $0x6f8] sm:$0xff] }
  0x73   :  { %776 = vmatpush1.bf16.msra.mxu0 %v775_v41  ;;  %v172_v41 = vld [vmem:[#allocation2 + $0x420] sm:$0xff] }
  0x74   :  { %840 = vmatpush1.bf16.msra.mxu1 %v839_v42  ;;  %778 = vmatprep.subr.bf16.mxu0 %v777_v43  ;;  %v180_v42 = vld [vmem:[#allocation2 + $0x460] sm:$0xff]  ;;  %v174_v43 = vld [vmem:[#allocation2 + $0x430] sm:$0xff] }
  0x75   :  { %842 = vmatprep.subr.bf16.mxu1 %v841_v47  ;;  %v197_v47 = vld [vmem:[#allocation2 + $0x4e8] sm:$0xff]  ;;  %v799_v50 = vpack.c.bf16 %v180_v42, %v172_v41  ;;  %v863_v51 = vpack.c.bf16 %v182_v45, %v174_v43  ;;  %v881_v41 = vpack.c.bf16 %v263_v34, %v255_v33  ;;  %v262_v42 = vld [vmem:[#allocation2 + $0x6f0] sm:$0xff]  ;;  %v271_v45 = vld [vmem:[#allocation2 + $0x738] sm:$0xff] }
  0x76   :  { %v801_v52 = vpack.c.bf16 %v197_v47, %v189_v46  ;;  %v269_v43 = vld [vmem:[#allocation2 + $0x728] sm:$0xff]  ;;  %v279_v46 = vld [vmem:[#allocation2 + $0x778] sm:$0xff] }
  0x77   :  { %780 = vmatpush1.bf16.msra.mxu0 %v779_v53  ;;  %v188_v53 = vld [vmem:[#allocation2 + $0x4a0] sm:$0xff] }
  0x78   :  { %844 = vmatpush1.bf16.msra.mxu1 %v843_v16  ;;  %782 = vmatprep.subr.bf16.mxu0 %v781_v54  ;;  %v196_v16 = vld [vmem:[#allocation2 + $0x4e0] sm:$0xff]  ;;  %v190_v54 = vld [vmem:[#allocation2 + $0x4b0] sm:$0xff] }
  0x79   :  { %846 = vmatprep.subr.bf16.mxu1 %v845_v58  ;;  %v213_v58 = vld [vmem:[#allocation2 + $0x568] sm:$0xff]  ;;  %v803_v61 = vpack.c.bf16 %v196_v16, %v188_v53  ;;  %v867_v62 = vpack.c.bf16 %v198_v56, %v190_v54  ;;  %v885_v53 = vpack.c.bf16 %v279_v46, %v271_v45  ;;  %v278_v16 = vld [vmem:[#allocation2 + $0x770] sm:$0xff]  ;;  %v287_v56 = vld [vmem:[#allocation2 + $0x7b8] sm:$0xff] }
  0x7a   :  { %v805_v63 = vpack.c.bf16 %v213_v58, %v205_v57  ;;  %v285_v54 = vld [vmem:[#allocation2 + $0x7a8] sm:$0xff]  ;;  %v295_v57 = vld [vmem:[#allocation2 + $0x7f8] sm:$0xff] }
  0x7b   :  { %784 = vmatpush1.bf16.msra.mxu0 %v783_v0  ;;  %v204_v0 = vld [vmem:[#allocation2 + $0x520] sm:$0xff] }
  0x7c   :  { %848 = vmatpush1.bf16.msra.mxu1 %v847_v1  ;;  %786 = vmatprep.subr.bf16.mxu0 %v785_v2  ;;  %v212_v1 = vld [vmem:[#allocation2 + $0x560] sm:$0xff]  ;;  %v206_v2 = vld [vmem:[#allocation2 + $0x530] sm:$0xff] }
  0x7d   :  { %850 = vmatprep.subr.bf16.mxu1 %v849_v6  ;;  %v229_v6 = vld [vmem:[#allocation2 + $0x5e8] sm:$0xff]  ;;  %v807_v9 = vpack.c.bf16 %v212_v1, %v204_v0  ;;  %v871_v10 = vpack.c.bf16 %v214_v4, %v206_v2  ;;  %v286_v0 = vld [vmem:[#allocation2 + $0x7b0] sm:$0xff] }
  0x7e   :  { %v809_v11 = vpack.c.bf16 %v229_v6, %v221_v5  ;;  %v294_v1 = vld [vmem:[#allocation2 + $0x7f0] sm:$0xff] }
  0x7f   :  { %788 = vmatpush1.bf16.msra.mxu0 %v787_v12  ;;  %v220_v12 = vld [vmem:[#allocation2 + $0x5a0] sm:$0xff] }
  0x80   :  { %852 = vmatpush1.bf16.msra.mxu1 %v851_v13  ;;  %790 = vmatprep.subr.bf16.mxu0 %v789_v14  ;;  %v228_v13 = vld [vmem:[#allocation2 + $0x5e0] sm:$0xff]  ;;  %v222_v14 = vld [vmem:[#allocation2 + $0x5b0] sm:$0xff] }
  0x81   :  { %854 = vmatprep.subr.bf16.mxu1 %v853_v20  ;;  %v245_v20 = vld [vmem:[#allocation2 + $0x668] sm:$0xff]  ;;  %v811_v23 = vpack.c.bf16 %v228_v13, %v220_v12  ;;  %v875_v24 = vpack.c.bf16 %v230_v18, %v222_v14 }
  0x82   :  { %v813_v25 = vpack.c.bf16 %v245_v20, %v237_v19 }
  0x83   :  { %792 = vmatpush1.bf16.msra.mxu0 %v791_v26  ;;  %v236_v26 = vld [vmem:[#allocation2 + $0x620] sm:$0xff] }
  0x84   :  { %856 = vmatpush1.bf16.msra.mxu1 %v855_v27  ;;  %794 = vmatprep.subr.bf16.mxu0 %v793_v28  ;;  %v244_v27 = vld [vmem:[#allocation2 + $0x660] sm:$0xff]  ;;  %v238_v28 = vld [vmem:[#allocation2 + $0x630] sm:$0xff] }
  0x85   :  { %858 = vmatprep.subr.bf16.mxu1 %v857_v32  ;;  %v261_v32 = vld [vmem:[#allocation2 + $0x6e8] sm:$0xff]  ;;  %v815_v35 = vpack.c.bf16 %v244_v27, %v236_v26  ;;  %v879_v36 = vpack.c.bf16 %v246_v30, %v238_v28 }
  0x86   :  { %v817_v37 = vpack.c.bf16 %v261_v32, %v253_v31 }
  0x87   :  { %796 = vmatpush1.bf16.msra.mxu0 %v795_v38  ;;  %v252_v38 = vld [vmem:[#allocation2 + $0x6a0] sm:$0xff] }
  0x88   :  { %860 = vmatpush1.bf16.msra.mxu1 %v859_v39  ;;  %798 = vmatprep.subr.bf16.mxu0 %v797_v40  ;;  %v260_v39 = vld [vmem:[#allocation2 + $0x6e0] sm:$0xff]  ;;  %v254_v40 = vld [vmem:[#allocation2 + $0x6b0] sm:$0xff] }
  0x89   :  { %862 = vmatprep.subr.bf16.mxu1 %v861_v44  ;;  %v277_v44 = vld [vmem:[#allocation2 + $0x768] sm:$0xff]  ;;  %v819_v47 = vpack.c.bf16 %v260_v39, %v252_v38  ;;  %v883_v48 = vpack.c.bf16 %v262_v42, %v254_v40 }
  0x8a   :  { %v821_v49 = vpack.c.bf16 %v277_v44, %v269_v43 }
  0x8b   :  { %800 = vmatpush1.bf16.msra.mxu0 %v799_v50  ;;  %v268_v50 = vld [vmem:[#allocation2 + $0x720] sm:$0xff] }
  0x8c   :  { %864 = vmatpush1.bf16.msra.mxu1 %v863_v51  ;;  %802 = vmatprep.subr.bf16.mxu0 %v801_v52  ;;  %v276_v51 = vld [vmem:[#allocation2 + $0x760] sm:$0xff]  ;;  %v270_v52 = vld [vmem:[#allocation2 + $0x730] sm:$0xff] }
  0x8d   :  { %866 = vmatprep.subr.bf16.mxu1 %v865_v55  ;;  %v293_v55 = vld [vmem:[#allocation2 + $0x7e8] sm:$0xff]  ;;  %v823_v58 = vpack.c.bf16 %v276_v51, %v268_v50  ;;  %v887_v59 = vpack.c.bf16 %v278_v16, %v270_v52 }
  0x8e   :  { %v825_v60 = vpack.c.bf16 %v293_v55, %v285_v54 }
  0x8f   :  { %804 = vmatpush1.bf16.msra.mxu0 %v803_v61  ;;  %v284_v61 = vld [vmem:[#allocation2 + $0x7a0] sm:$0xff] }
  0x90   :  { %868 = vmatpush1.bf16.msra.mxu1 %v867_v62  ;;  %806 = vmatprep.subr.bf16.mxu0 %v805_v63  ;;  %v292_v62 = vld [vmem:[#allocation2 + $0x7e0] sm:$0xff]  ;;  %v889_v63 = vpack.c.bf16 %v295_v57, %v287_v56 }
  0x91   :  { %870 = vmatprep.subr.bf16.mxu1 %v869_v3  ;;  %v827_v2 = vpack.c.bf16 %v292_v62, %v284_v61  ;;  %v891_v3 = vpack.c.bf16 %v294_v1, %v286_v0 }
  0x93   :  { %808 = vmatpush1.bf16.msra.mxu0 %v807_v9 }
  0x94   :  { %872 = vmatpush1.bf16.msra.mxu1 %v871_v10  ;;  %810 = vmatprep.subr.bf16.mxu0 %v809_v11 }
  0x95   :  { %874 = vmatprep.subr.bf16.mxu1 %v873_v17 }
  0x97   :  { %812 = vmatpush1.bf16.msra.mxu0 %v811_v23 }
  0x98   :  { %876 = vmatpush1.bf16.msra.mxu1 %v875_v24  ;;  %814 = vmatprep.subr.bf16.mxu0 %v813_v25 }
  0x99   :  { %878 = vmatprep.subr.bf16.mxu1 %v877_v29 }
  0x9b   :  { %816 = vmatpush1.bf16.msra.mxu0 %v815_v35 }
  0x9c   :  { %880 = vmatpush1.bf16.msra.mxu1 %v879_v36  ;;  %818 = vmatprep.subr.bf16.mxu0 %v817_v37 }
  0x9d   :  { %882 = vmatprep.subr.bf16.mxu1 %v881_v41 }
  0x9f   :  { %820 = vmatpush1.bf16.msra.mxu0 %v819_v47 }
  0xa0   :  { %884 = vmatpush1.bf16.msra.mxu1 %v883_v48  ;;  %822 = vmatprep.subr.bf16.mxu0 %v821_v49 }
  0xa1   :  { %886 = vmatprep.subr.bf16.mxu1 %v885_v53 }
  0xa3   :  { %824 = vmatpush1.bf16.msra.mxu0 %v823_v58 }
  0xa4   :  { %888 = vmatpush1.bf16.msra.mxu1 %v887_v59  ;;  %826 = vmatprep.subr.bf16.mxu0 %v825_v60 }
  0xa5   :  { %890 = vmatprep.subr.bf16.mxu1 %v889_v63 }
  0xa7   :  { %828 = vmatpush1.bf16.msra.mxu0 %v827_v2 }
  0xa8   :  { %892 = vmatpush1.bf16.msra.mxu1 %v891_v3 }
  0xaa   :  { %503 = vmatmul.mubr.f32.vlgmr.msra.gmra.mrb[2].mxu0 %v1022_v15 }
  0xab   :  { %574 = vmatmul.mubr.f32.vlgmr.msra.gmra.mrb[2].mxu1 %v1022_v15 }
 0x13d   :  { %v362_v4 = vpop.f32.mrb[0].mxu0 }
 0x13e   :  { %v433_v5 = vpop.f32.mrb[0].mxu1  ;;  %v364_v6 = vpop.f32.mrb[1].mxu0 }
 0x13f   :  { %v582_v7 = vcombine.low %v362_v4, %v364_v6  ;;  %v603_v8 = vcombine.high %v362_v4, %v364_v6  ;;  %v435_v9 = vpop.f32.mrb[1].mxu1 }
 0x140   :  { %v587_v10 = vcombine.low %v433_v5, %v435_v9  ;;  %v607_v11 = vcombine.high %v433_v5, %v435_v9 }
 0x141   :  { %584 = vst [vmem:[#allocation7] sm:$0xff] %v582_v7  ;;  %606 = vst [vmem:[#allocation7 + $0x20] sm:$0xff] %v603_v8 }
 0x142   :  { %590 = vst [vmem:[#allocation7 + $0x8] sm:$0xff] %v587_v10  ;;  %610 = vst [vmem:[#allocation7 + $0x28] sm:$0xff] %v607_v11 }
 0x17d   :  { %v504_v12 = vpop.f32.mrb[2].mxu0 }
 0x17e   :  { %v575_v13 = vpop.f32.mrb[2].mxu1  ;;  %v506_v14 = vpop.f32.mrb[3].mxu0 }
 0x17f   :  { %v593_v17 = vcombine.low %v504_v12, %v506_v14  ;;  %v611_v18 = vcombine.high %v504_v12, %v506_v14  ;;  %v577_v15 = vpop.f32.mrb[3].mxu1 }
 0x180   :  { %v599_v19 = vcombine.low %v575_v13, %v577_v15  ;;  %v615_v20 = vcombine.high %v575_v13, %v577_v15 }
 0x181   :  { %596 = vst [vmem:[#allocation7 + $0x10] sm:$0xff] %v593_v17  ;;  %614 = vst [vmem:[#allocation7 + $0x30] sm:$0xff] %v611_v18 }
 0x182   :  { %602 = vst [vmem:[#allocation7 + $0x18] sm:$0xff] %v599_v19  ;;  %618 = vst [vmem:[#allocation7 + $0x38] sm:$0xff] %v615_v20 }
 0x183   :  { %955 = shalt.err (!%p952_p6)
}
 0x184   :  { %s956_s10 = scalar_lea.hbm %s1044_s2, 1024 }
 0x185   :  { %p957_p7 = scmp.ne.s32.totalorder %s1044_s2, %s956_s10  ;;  %p960_p8 = scmp.lt.u32.totalorder %s956_s10, %s1044_s2 }
 0x187   :  { %p962_p9 = pnand %p960_p8, %p957_p7 }
 0x189   :  { %965 = shalt.err (!%p962_p9)
}
 0x18a   :  { %s977_s15 = smov 128   ;;  %s978_s16 = smov 8  }
 0x18b   :  { %630 = dma.vmem_to_hbm [thread:$0]  %s625_s6, 1024, %s1044_s2, [#allocation4], %s977_s15, %s977_s15, %s978_s16  }
 0x18c   :  { %970 = dma.done.wait [#allocation4], 1024  }
 0x18d   :  { %971 = vsyncadd [#allocation4], 4294966272 }
 0x18e   :  { %634 = vsyncpa [#allocation3], 1 }
 0x18f   :  { %635 = vsyncpa [#allocation6], 1 }
 0x190   :  { %636 = vsyncpa [#allocation4], 1 }

</bundles_post_ra>
